<compile_context>
chip_gen: v7x
topology: tpu7x:2x2x1
jax: 0.10.0
libtpu: 0.0.40
codegen_flags: <defaults>
</compile_context>

<pallas_src>
import jax
import jax.numpy as jnp
from jax.experimental import pallas as pl
from jax.experimental.pallas import tpu as pltpu


# ----------------------------- Pallas kernel --------------------------------

def dual_poly_kernel(hidden_ref, cls_ref, poly_ref, pool_w_ref, pool_b_ref,
                     out_ref):
    """Both poly-encoder branches in one invocation.

    hidden_ref : (2, B, S, H) bf16  [0] = context hidden, [1] = candidate hidden
    cls_ref    : (2B, H)      bf16  rows [0:B]  = candidate [CLS] (branch-0 query)
                                    rows [B:2B] = context   [CLS] (branch-1 query)
    poly_ref   : (2, C, H)    bf16  [0] = poly_codes_for_context, [1] = ..._candidate
    pool_w_ref : (H, H)       bf16  shared BERT pooler weight
    pool_b_ref : (1, H)       f32   shared BERT pooler bias
    out_ref    : (2, B)       f32   row 0 = negative score, row 1 = positive score
    """
    _, B, S, H = hidden_ref.shape
    C = poly_ref.shape[1]

    # ---- fused BERT pooler, computed ONCE for both branches ----------------
    # (2B, H) @ (H, H) bf16 on the MXU with f32 accumulation.
    pooled = jnp.tanh(
        jnp.dot(cls_ref[...], pool_w_ref[...],
                preferred_element_type=jnp.float32) + pool_b_ref[...])  # (2B, H)

    for g in range(2):                         # static 2-way loop over branches
        hidden = hidden_ref[g]                 # (B, S, H) bf16
        poly = poly_ref[g]                     # (C, H)    bf16
        cls_q = pooled[g * B:(g + 1) * B, :]   # (B, H)    f32 pooled query CLS

        # --- attention 1: poly codes vs hidden, softmax over the BATCH dim --
        # Single unbatched (B*S,H) x (H,C) matmul (a @ b.T); no poly broadcast.
        w1 = jax.lax.dot_general(
            hidden.reshape(B * S, H), poly, (((1,), (1,)), ((), ())),
            preferred_element_type=jnp.float32).reshape(B, S, C)
        m1 = jnp.max(w1, axis=0, keepdims=True)
        e1 = jnp.exp(w1 - m1)
        s1 = e1 * pl.reciprocal(jnp.sum(e1, axis=0, keepdims=True),
                                approx=False)                     # (B, S, C)

        # --- attention 2 (q-len 1) + score: VPU/XLU only ---------------------
        # poly_emb[b,c,:] = sum_s s1[b,s,c] * hidden[b,s,:] is never formed:
        #   t[b,s]   = <cls_q[b], hidden[b,s]>
        #   w2[b,c]  = <cls_q[b], poly_emb[b,c]> = sum_s s1[b,s,c] * t[b,s]
        #   u[b,s]   = sum_c softmax_b(w2)[b,c] * s1[b,s,c]
        #   score[b] = <cls_q[b], embed[b]>      = sum_s u[b,s] * t[b,s]
        hidden_f32 = hidden.astype(jnp.float32)
        t = jnp.sum(cls_q[:, None, :] * hidden_f32, axis=-1)      # (B, S)
        w2 = jnp.sum(s1 * t[:, :, None], axis=1)                  # (B, C)
        m2 = jnp.max(w2, axis=0, keepdims=True)
        e2 = jnp.exp(w2 - m2)
        s2 = e2 * pl.reciprocal(jnp.sum(e2, axis=0, keepdims=True),
                                approx=False)                     # (B, C)
        u = jnp.sum(s2[:, None, :] * s1, axis=-1)                 # (B, S)
        out_ref[g, :] = jnp.sum(u * t, axis=-1)                   # (B,)


def dual_poly_scores(ctx_hidden, cand_hidden, ctx_cls_tok, cand_cls_tok,
                     pool_w, pool_b, poly_ctx, poly_cand):
    """Pallas wrapper: returns final_score = positive - negative, shape (B,)."""
    B, S, H = ctx_hidden.shape
    cdt = jnp.bfloat16

    # branch 0 (negative): poly_ctx attends ctx_hidden, queried by candidate CLS
    # branch 1 (positive): poly_cand attends cand_hidden, queried by context CLS
    hidden_all = jnp.stack([ctx_hidden, cand_hidden]).astype(cdt)      # (2,B,S,H)
    poly_all = jnp.stack([poly_ctx, poly_cand]).astype(cdt)            # (2,C,H)
    cls_all = jnp.concatenate([cand_cls_tok, ctx_cls_tok],
                              axis=0).astype(cdt)                      # (2B,H)

    scores = pl.pallas_call(
        dual_poly_kernel,
        out_shape=jax.ShapeDtypeStruct((2, B), jnp.float32),
        in_specs=[pl.BlockSpec(memory_space=pltpu.MemorySpace.VMEM)] * 5,
        out_specs=pl.BlockSpec(memory_space=pltpu.MemorySpace.VMEM),
        # Whole problem (<2 MiB including the bf16 pooler weight) is resident
        # in VMEM for a single invocation: no grid, no double-buffering.  If
        # S/B are scaled up, add a sequence grid axis ("arbitrary") with an
        # f32 accumulator scratch and set vmem_limit_bytes explicitly.
    )(hidden_all, cls_all, poly_all,
      pool_w.astype(cdt), pool_b.reshape(1, H).astype(jnp.float32))

    negative_score = scores[0]
    positive_score = scores[1]
    return positive_score - negative_score


# ------------------------------ glue / stubs --------------------------------

def make_params(key, vocab, hidden, codes):
    k1, k2, k3, k4, k5 = jax.random.split(key, 5)
    return {
        # deterministic stand-in for the external BERT encoder
        "tok_emb": jax.random.normal(k1, (vocab, hidden), jnp.float32) * 0.02,
        "pool_w": jax.random.normal(k2, (hidden, hidden), jnp.float32) * 0.02,
        "pool_b": jax.random.normal(k3, (hidden,), jnp.float32) * 0.02,
        # poly-code embeddings: uniform(-0.1, 0.1) as in init_weights()
        "poly_ctx": jax.random.uniform(k4, (codes, hidden), jnp.float32,
                                       minval=-0.1, maxval=0.1),
        "poly_cand": jax.random.uniform(k5, (codes, hidden), jnp.float32,
                                        minval=-0.1, maxval=0.1),
    }


def encoder_stub(params, input_ids, attention_mask):
    """Deterministic BERT stand-in: returns last_hidden_state only (the pooler
    is fused into the Pallas kernel / replicated in pooler_ref)."""
    emb = params["tok_emb"][input_ids]                          # (B, L, H)
    return emb * attention_mask[..., None].astype(emb.dtype)


def pooler_ref(params, last_hidden):
    return jnp.tanh(last_hidden[:, 0, :] @ params["pool_w"] + params["pool_b"])


def forward(params, context_input_ids, context_attention_mask,
            candidate_input_ids, candidate_attention_mask):
    ctx_hidden = encoder_stub(params, context_input_ids, context_attention_mask)
    cand_hidden = encoder_stub(params, candidate_input_ids,
                               candidate_attention_mask)
    # The pooler matmul runs inside the Pallas kernel; only the raw [CLS]
    # hidden states are handed in.
    return dual_poly_scores(
        ctx_hidden, cand_hidden,
        ctx_hidden[:, 0, :], cand_hidden[:, 0, :],
        params["pool_w"], params["pool_b"],
        params["poly_ctx"], params["poly_cand"])


# ------------------------------ pure-JAX reference --------------------------

def _dot_attention_ref(q, k, v):
    w = jnp.einsum("bqh,bkh->bqk", q, k)
    s = jax.nn.softmax(w, axis=0)        # dim=0 (batch) as in the PyTorch code
    return jnp.einsum("bqk,bkh->bqh", s, v)


def forward_ref(params, ctx_ids, ctx_mask, cand_ids, cand_mask):
    ctx_hidden = encoder_stub(params, ctx_ids, ctx_mask)
    cand_hidden = encoder_stub(params, cand_ids, cand_mask)
    ctx_cls = pooler_ref(params, ctx_hidden)[:, None, :]
    cand_cls = pooler_ref(params, cand_hidden)[:, None, :]
    B = ctx_ids.shape[0]
    C, H = params["poly_ctx"].shape

    poly_ctx = jnp.broadcast_to(params["poly_ctx"][None], (B, C, H))
    ctxt_poly = _dot_attention_ref(poly_ctx, ctx_hidden, ctx_hidden)
    ctxt_embed = _dot_attention_ref(cand_cls, ctxt_poly, ctxt_poly)
    neg = jnp.einsum("bqh,bkh->bqk", cand_cls, ctxt_embed).reshape(-1)

    poly_cand = jnp.broadcast_to(params["poly_cand"][None], (B, C, H))
    cand_poly = _dot_attention_ref(poly_cand, cand_hidden, cand_hidden)
    cand_embed = _dot_attention_ref(ctx_cls, cand_poly, cand_poly)
    pos = jnp.einsum("bqh,bkh->bqk", ctx_cls, cand_embed).reshape(-1)
    return pos - neg


# ---------------------------------- main -------------------------------------

if __name__ == "__main__":
    B, L, H, C, VOCAB = 2, 8, 768, 16, 64

    key = jax.random.PRNGKey(0)
    kp, k_ctx, k_cand = jax.random.split(key, 3)
    params = make_params(kp, VOCAB, H, C)

    context_input_ids = jax.random.randint(k_ctx, (B, L), 0, VOCAB, jnp.int32)
    candidate_input_ids = jax.random.randint(k_cand, (B, L), 0, VOCAB, jnp.int32)
    context_attention_mask = jnp.ones((B, L), jnp.int32).at[:, -1].set(0)
    candidate_attention_mask = jnp.ones((B, L), jnp.int32).at[:, -2:].set(0)

    final_score = forward(params, context_input_ids, context_attention_mask,
                          candidate_input_ids, candidate_attention_mask)
    final_score = jax.block_until_ready(final_score)

    ref_score = forward_ref(params, context_input_ids, context_attention_mask,
                            candidate_input_ids, candidate_attention_mask)
    ref_score = jax.block_until_ready(ref_score)

    assert final_score.shape == (B,)
    # Tolerance covers the bf16 quantization of the kernel's inputs (hidden
    # states, CLS tokens, poly codes, pooler weight) vs the f32 XLA reference;
    # softmax / accumulation math inside the kernel is f32.  Estimated error is
    # ~1-2% relative (abs ~1e-4) on scores of O(1e-2).
    assert jnp.allclose(final_score, ref_score, rtol=2e-2, atol=2e-3), (
        final_score, ref_score)

    print("KERNEL_OK")
</pallas_src>

<mosaic_0001>
module attributes {stable_mosaic.version = 11 : i64} {
  func.func @dual_poly_kernel(%arg0: memref<2x2x8x768xbf16, #tpu.memory_space<vmem>>, %arg1: memref<4x768xbf16, #tpu.memory_space<vmem>>, %arg2: memref<2x16x768xbf16, #tpu.memory_space<vmem>>, %arg3: memref<768x768xbf16, #tpu.memory_space<vmem>>, %arg4: memref<1x768xf32, #tpu.memory_space<vmem>>, %arg5: memref<2x2xf32, #tpu.memory_space<vmem>>) attributes {dimension_semantics = [], scalar_prefetch = 0 : i64, scratch_operands = 0 : i64, tpu.core_type = #tpu.core_type<tc>} {
    %c0 = arith.constant 0 : index
    %c0_0 = arith.constant 0 : index
    %0 = vector.load %arg1[%c0, %c0_0] : memref<4x768xbf16, #tpu.memory_space<vmem>>, vector<4x768xbf16>
    %c0_1 = arith.constant 0 : index
    %c0_2 = arith.constant 0 : index
    %1 = vector.load %arg3[%c0_1, %c0_2] : memref<768x768xbf16, #tpu.memory_space<vmem>>, vector<768x768xbf16>
    %cst = arith.constant dense<0.000000e+00> : vector<4x768xf32>
    %2 = tpu.matmul %0, %1, %cst {dimension_numbers = #tpu.dot_dimension_numbers<[1], [0], [0], [1], [0, 0, 1, 1], [], []>} : vector<4x768xbf16>, vector<768x768xbf16>, vector<4x768xf32> -> vector<4x768xf32>
    %c0_3 = arith.constant 0 : index
    %c0_4 = arith.constant 0 : index
    %3 = vector.load %arg4[%c0_3, %c0_4] : memref<1x768xf32, #tpu.memory_space<vmem>>, vector<1x768xf32>
    %4 = vector.broadcast %3 : vector<1x768xf32> to vector<4x768xf32>
    %5 = arith.addf %2, %4 : vector<4x768xf32>
    %6 = math.tanh %5 : vector<4x768xf32>
    %c0_5 = arith.constant 0 : index
    %c0_6 = arith.constant 0 : index
    %c0_7 = arith.constant 0 : index
    %c0_8 = arith.constant 0 : index
    %7 = vector.load %arg0[%c0_5, %c0_6, %c0_7, %c0_8] : memref<2x2x8x768xbf16, #tpu.memory_space<vmem>>, vector<1x2x8x768xbf16>
    %8 = vector.shape_cast %7 : vector<1x2x8x768xbf16> to vector<2x8x768xbf16>
    %c0_9 = arith.constant 0 : index
    %c0_10 = arith.constant 0 : index
    %c0_11 = arith.constant 0 : index
    %9 = vector.load %arg2[%c0_9, %c0_10, %c0_11] : memref<2x16x768xbf16, #tpu.memory_space<vmem>>, vector<1x16x768xbf16>
    %10 = vector.shape_cast %9 : vector<1x16x768xbf16> to vector<16x768xbf16>
    %11 = vector.extract_strided_slice %6 {offsets = [0, 0], sizes = [2, 768], strides = [1, 1]} : vector<4x768xf32> to vector<2x768xf32>
    %12 = vector.shape_cast %8 : vector<2x8x768xbf16> to vector<16x768xbf16>
    %cst_12 = arith.constant dense<0.000000e+00> : vector<16x16xf32>
    %13 = tpu.matmul %12, %10, %cst_12 {dimension_numbers = #tpu.dot_dimension_numbers<[1], [1], [0], [0], [0, 0, 1, 0], [], []>} : vector<16x768xbf16>, vector<16x768xbf16>, vector<16x16xf32> -> vector<16x16xf32>
    %14 = vector.shape_cast %13 : vector<16x16xf32> to vector<2x8x16xf32>
    %cst_13 = arith.constant dense<0xFF800000> : vector<8x16xf32>
    %15 = vector.multi_reduction <maximumf>, %14, %cst_13 [0] : vector<2x8x16xf32> to vector<8x16xf32>
    %16 = vector.shape_cast %15 : vector<8x16xf32> to vector<1x8x16xf32>
    %17 = vector.broadcast %16 : vector<1x8x16xf32> to vector<2x8x16xf32>
    %18 = arith.subf %14, %17 : vector<2x8x16xf32>
    %19 = math.exp %18 : vector<2x8x16xf32>
    %cst_14 = arith.constant dense<0.000000e+00> : vector<8x16xf32>
    %20 = vector.multi_reduction <add>, %19, %cst_14 [0] : vector<2x8x16xf32> to vector<8x16xf32>
    %21 = vector.shape_cast %20 : vector<8x16xf32> to vector<1x8x16xf32>
    %22 = tpu.reciprocal %21 : vector<1x8x16xf32> -> vector<1x8x16xf32>
    %23 = vector.broadcast %22 : vector<1x8x16xf32> to vector<2x8x16xf32>
    %24 = arith.mulf %19, %23 : vector<2x8x16xf32>
    %25 = arith.extf %8 : vector<2x8x768xbf16> to vector<2x8x768xf32>
    %26 = vector.shape_cast %11 : vector<2x768xf32> to vector<2x1x768xf32>
    %27 = vector.broadcast %26 : vector<2x1x768xf32> to vector<2x8x768xf32>
    %28 = arith.mulf %27, %25 : vector<2x8x768xf32>
    %cst_15 = arith.constant dense<0.000000e+00> : vector<2x8xf32>
    %29 = vector.multi_reduction <add>, %28, %cst_15 [2] : vector<2x8x768xf32> to vector<2x8xf32>
    %30 = vector.shape_cast %29 : vector<2x8xf32> to vector<2x8x1xf32>
    %31 = vector.broadcast %30 : vector<2x8x1xf32> to vector<2x8x16xf32>
    %32 = arith.mulf %24, %31 : vector<2x8x16xf32>
    %cst_16 = arith.constant dense<0.000000e+00> : vector<2x16xf32>
    %33 = vector.multi_reduction <add>, %32, %cst_16 [1] : vector<2x8x16xf32> to vector<2x16xf32>
    %cst_17 = arith.constant dense<0xFF800000> : vector<16xf32>
    %34 = vector.multi_reduction <maximumf>, %33, %cst_17 [0] : vector<2x16xf32> to vector<16xf32>
    %35 = vector.shape_cast %34 : vector<16xf32> to vector<1x16xf32>
    %36 = vector.broadcast %35 : vector<1x16xf32> to vector<2x16xf32>
    %37 = arith.subf %33, %36 : vector<2x16xf32>
    %38 = math.exp %37 : vector<2x16xf32>
    %cst_18 = arith.constant dense<0.000000e+00> : vector<16xf32>
    %39 = vector.multi_reduction <add>, %38, %cst_18 [0] : vector<2x16xf32> to vector<16xf32>
    %40 = vector.shape_cast %39 : vector<16xf32> to vector<1x16xf32>
    %41 = tpu.reciprocal %40 : vector<1x16xf32> -> vector<1x16xf32>
    %42 = vector.broadcast %41 : vector<1x16xf32> to vector<2x16xf32>
    %43 = arith.mulf %38, %42 : vector<2x16xf32>
    %44 = vector.shape_cast %43 : vector<2x16xf32> to vector<2x1x16xf32>
    %45 = vector.broadcast %44 : vector<2x1x16xf32> to vector<2x8x16xf32>
    %46 = arith.mulf %45, %24 : vector<2x8x16xf32>
    %cst_19 = arith.constant dense<0.000000e+00> : vector<2x8xf32>
    %47 = vector.multi_reduction <add>, %46, %cst_19 [2] : vector<2x8x16xf32> to vector<2x8xf32>
    %48 = arith.mulf %47, %29 : vector<2x8xf32>
    %cst_20 = arith.constant dense<0.000000e+00> : vector<2xf32>
    %49 = vector.multi_reduction <add>, %48, %cst_20 [1] : vector<2x8xf32> to vector<2xf32>
    %c0_21 = arith.constant 0 : index
    %c0_22 = arith.constant 0 : index
    %50 = vector.load %arg5[%c0_21, %c0_22] : memref<2x2xf32, #tpu.memory_space<vmem>>, vector<1x2xf32>
    %51 = vector.shape_cast %50 : vector<1x2xf32> to vector<2xf32>
    %52 = vector.shape_cast %49 : vector<2xf32> to vector<1x2xf32>
    tpu.vector_store %arg5[%c0_21, %c0_22], %52 {strides = array<i32>} : memref<2x2xf32, #tpu.memory_space<vmem>>, vector<1x2xf32>,
    %c1 = arith.constant 1 : index
    %c0_23 = arith.constant 0 : index
    %c0_24 = arith.constant 0 : index
    %c0_25 = arith.constant 0 : index
    %53 = vector.load %arg0[%c1, %c0_23, %c0_24, %c0_25] : memref<2x2x8x768xbf16, #tpu.memory_space<vmem>>, vector<1x2x8x768xbf16>
    %54 = vector.shape_cast %53 : vector<1x2x8x768xbf16> to vector<2x8x768xbf16>
    %c1_26 = arith.constant 1 : index
    %c0_27 = arith.constant 0 : index
    %c0_28 = arith.constant 0 : index
    %55 = vector.load %arg2[%c1_26, %c0_27, %c0_28] : memref<2x16x768xbf16, #tpu.memory_space<vmem>>, vector<1x16x768xbf16>
    %56 = vector.shape_cast %55 : vector<1x16x768xbf16> to vector<16x768xbf16>
    %57 = vector.extract_strided_slice %6 {offsets = [2, 0], sizes = [2, 768], strides = [1, 1]} : vector<4x768xf32> to vector<2x768xf32>
    %58 = vector.shape_cast %54 : vector<2x8x768xbf16> to vector<16x768xbf16>
    %cst_29 = arith.constant dense<0.000000e+00> : vector<16x16xf32>
    %59 = tpu.matmul %58, %56, %cst_29 {dimension_numbers = #tpu.dot_dimension_numbers<[1], [1], [0], [0], [0, 0, 1, 0], [], []>} : vector<16x768xbf16>, vector<16x768xbf16>, vector<16x16xf32> -> vector<16x16xf32>
    %60 = vector.shape_cast %59 : vector<16x16xf32> to vector<2x8x16xf32>
    %cst_30 = arith.constant dense<0xFF800000> : vector<8x16xf32>
    %61 = vector.multi_reduction <maximumf>, %60, %cst_30 [0] : vector<2x8x16xf32> to vector<8x16xf32>
    %62 = vector.shape_cast %61 : vector<8x16xf32> to vector<1x8x16xf32>
    %63 = vector.broadcast %62 : vector<1x8x16xf32> to vector<2x8x16xf32>
    %64 = arith.subf %60, %63 : vector<2x8x16xf32>
    %65 = math.exp %64 : vector<2x8x16xf32>
    %cst_31 = arith.constant dense<0.000000e+00> : vector<8x16xf32>
    %66 = vector.multi_reduction <add>, %65, %cst_31 [0] : vector<2x8x16xf32> to vector<8x16xf32>
    %67 = vector.shape_cast %66 : vector<8x16xf32> to vector<1x8x16xf32>
    %68 = tpu.reciprocal %67 : vector<1x8x16xf32> -> vector<1x8x16xf32>
    %69 = vector.broadcast %68 : vector<1x8x16xf32> to vector<2x8x16xf32>
    %70 = arith.mulf %65, %69 : vector<2x8x16xf32>
    %71 = arith.extf %54 : vector<2x8x768xbf16> to vector<2x8x768xf32>
    %72 = vector.shape_cast %57 : vector<2x768xf32> to vector<2x1x768xf32>
    %73 = vector.broadcast %72 : vector<2x1x768xf32> to vector<2x8x768xf32>
    %74 = arith.mulf %73, %71 : vector<2x8x768xf32>
    %cst_32 = arith.constant dense<0.000000e+00> : vector<2x8xf32>
    %75 = vector.multi_reduction <add>, %74, %cst_32 [2] : vector<2x8x768xf32> to vector<2x8xf32>
    %76 = vector.shape_cast %75 : vector<2x8xf32> to vector<2x8x1xf32>
    %77 = vector.broadcast %76 : vector<2x8x1xf32> to vector<2x8x16xf32>
    %78 = arith.mulf %70, %77 : vector<2x8x16xf32>
    %cst_33 = arith.constant dense<0.000000e+00> : vector<2x16xf32>
    %79 = vector.multi_reduction <add>, %78, %cst_33 [1] : vector<2x8x16xf32> to vector<2x16xf32>
    %cst_34 = arith.constant dense<0xFF800000> : vector<16xf32>
    %80 = vector.multi_reduction <maximumf>, %79, %cst_34 [0] : vector<2x16xf32> to vector<16xf32>
    %81 = vector.shape_cast %80 : vector<16xf32> to vector<1x16xf32>
    %82 = vector.broadcast %81 : vector<1x16xf32> to vector<2x16xf32>
    %83 = arith.subf %79, %82 : vector<2x16xf32>
    %84 = math.exp %83 : vector<2x16xf32>
    %cst_35 = arith.constant dense<0.000000e+00> : vector<16xf32>
    %85 = vector.multi_reduction <add>, %84, %cst_35 [0] : vector<2x16xf32> to vector<16xf32>
    %86 = vector.shape_cast %85 : vector<16xf32> to vector<1x16xf32>
    %87 = tpu.reciprocal %86 : vector<1x16xf32> -> vector<1x16xf32>
    %88 = vector.broadcast %87 : vector<1x16xf32> to vector<2x16xf32>
    %89 = arith.mulf %84, %88 : vector<2x16xf32>
    %90 = vector.shape_cast %89 : vector<2x16xf32> to vector<2x1x16xf32>
    %91 = vector.broadcast %90 : vector<2x1x16xf32> to vector<2x8x16xf32>
    %92 = arith.mulf %91, %70 : vector<2x8x16xf32>
    %cst_36 = arith.constant dense<0.000000e+00> : vector<2x8xf32>
    %93 = vector.multi_reduction <add>, %92, %cst_36 [2] : vector<2x8x16xf32> to vector<2x8xf32>
    %94 = arith.mulf %93, %75 : vector<2x8xf32>
    %cst_37 = arith.constant dense<0.000000e+00> : vector<2xf32>
    %95 = vector.multi_reduction <add>, %94, %cst_37 [1] : vector<2x8xf32> to vector<2xf32>
    %c1_38 = arith.constant 1 : index
    %c0_39 = arith.constant 0 : index
    %96 = vector.load %arg5[%c1_38, %c0_39] : memref<2x2xf32, #tpu.memory_space<vmem>>, vector<1x2xf32>
    %97 = vector.shape_cast %96 : vector<1x2xf32> to vector<2xf32>
    %98 = vector.shape_cast %95 : vector<2xf32> to vector<1x2xf32>
    tpu.vector_store %arg5[%c1_38, %c0_39], %98 {strides = array<i32>} : memref<2x2xf32, #tpu.memory_space<vmem>>, vector<1x2xf32>,
    return
  }
}

</mosaic_0001>

<bundles_post_ra>
// kernel: tpu_custom_call.1
= control target key start
LH: loop header
LB: loop body
LE: loop exit
PB: predicated region body
PF: predicated region fallthrough
CT: control target
= control target key end

     0   :  { %10 = vsyncpa [#allocation3], 0  ;;  %s4544_s0 = inlined_call_operand.hbm [shape: bf16[2,2,8,768], index: 0, kind: input, shape index: {}]   ;;  %s4545_s1 = inlined_call_operand.hbm [shape: bf16[4,768], index: 1, kind: input, shape index: {}]   ;;  %s4546_s2 = inlined_call_operand.hbm [shape: bf16[2,16,768], index: 2, kind: input, shape index: {}]   ;;  %s4547_s3 = inlined_call_operand.hbm [shape: bf16[768,768], index: 3, kind: input, shape index: {}]   ;;  %s4548_s4 = inlined_call_operand.hbm [shape: f32[1,768], index: 4, kind: input, shape index: {}]   ;;  %s4549_s5 = inlined_call_operand.hbm [shape: f32[2,2], index: 5, kind: output, shape index: {}]  }
   0x1   :  { %11 = vsyncpa [#allocation6], 0 }
   0x2   :  { %12 = vsyncpa [#allocation9], 0 }
   0x3   :  { %13 = vsyncpa [#allocation4], 0  ;;  %s4138_s18 = smov [#allocation5]   ;;  %s3998_s22 = scalar_lea.hbm %s4545_s1, 192 }
   0x4   :  { %s32_s19 = sshll.u32 %s4138_s18, 4  ;;  %p3999_p0 = scmp.ne.s32.totalorder %s4545_s1, %s3998_s22  ;;  %s33_s19 = int_to_ptr.vmem [resolvable:$true] %s32_s19 }
   0x5   :  { %p4002_p1 = scmp.lt.u32.totalorder %s3998_s22, %s4545_s1 }
   0x7   :  { %p4004_p2 = pnand %p4002_p1, %p3999_p0 }
   0x9   :  { %4007 = shalt.err (!%p4004_p2)
}
   0xa   :  { %s4008_s27 = scalar_lea.vmem %s33_s19, 192  ;;  %p4013_p4 = scmp.lt.s32.totalorder %s33_s19, %s33_s19 }
   0xb   :  { %p4009_p3 = scmp.ne.s32.totalorder %s33_s19, %s4008_s27  ;;  %p4014_p5 = scmp.lt.s32.totalorder %s4008_s27, %s4008_s27 }
   0xd   :  { %p4015_p6 = por %p4014_p5, %p4013_p4 }
   0xf   :  { %p4016_p7 = pnand %p4015_p6, %p4009_p3 }
  0x11   :  { %4019 = shalt.err (!%p4016_p7)
}
  0x12   :  { %35 = dma.hbm_to_vmem [thread:$0]  %s4545_s1, 192, %s33_s19, [#allocation6]  }
  0x13   :  { %s4139_s30 = smov [#allocation8]   ;;  %s4140_s7 = smov [#allocation2]  }
  0x14   :  { %s53_s6 = sshll.u32 %s4139_s30, 4  ;;  %s19_s8 = sshll.u32 %s4140_s7, 4  ;;  %s54_s6 = int_to_ptr.vmem [resolvable:$true] %s53_s6  ;;  %s20_s8 = int_to_ptr.vmem [resolvable:$true] %s19_s8 }
  0x15   :  { %s4020_s11 = scalar_lea.hbm %s4547_s3, 36864 }
  0x16   :  { %p4021_p8 = scmp.ne.s32.totalorder %s4547_s3, %s4020_s11  ;;  %p4024_p9 = scmp.lt.u32.totalorder %s4020_s11, %s4547_s3 }
  0x18   :  { %p4026_p10 = pnand %p4024_p9, %p4021_p8 }
  0x1a   :  { %4029 = shalt.err (!%p4026_p10)
}
  0x1b   :  { %s4030_s1 = scalar_lea.vmem %s54_s6, 36864  ;;  %p4035_p12 = scmp.lt.s32.totalorder %s54_s6, %s54_s6 }
  0x1c   :  { %p4031_p11 = scmp.ne.s32.totalorder %s54_s6, %s4030_s1  ;;  %p4036_p13 = scmp.lt.s32.totalorder %s4030_s1, %s4030_s1 }
  0x1e   :  { %p4037_p0 = por %p4036_p13, %p4035_p12 }
  0x20   :  { %p4038_p1 = pnand %p4037_p0, %p4031_p11 }
  0x22   :  { %4041 = shalt.err (!%p4038_p1)
}
  0x23   :  { %s4141_s16 = smov 384   ;;  %s4142_s17 = smov 24  }
  0x24   :  { %59 = dma.hbm_to_vmem [thread:$0]  %s4547_s3, 36864, %s54_s6, [#allocation9], %s4141_s16, %s4141_s16, %s4142_s17  }
  0x25   :  { %s4042_s22 = scalar_lea.hbm %s4544_s0, 1536 }
  0x26   :  { %p4043_p2 = scmp.ne.s32.totalorder %s4544_s0, %s4042_s22  ;;  %p4046_p3 = scmp.lt.u32.totalorder %s4042_s22, %s4544_s0 }
  0x28   :  { %p4048_p4 = pnand %p4046_p3, %p4043_p2 }
  0x2a   :  { %4051 = shalt.err (!%p4048_p4)
}
  0x2b   :  { %s4052_s27 = scalar_lea.vmem %s20_s8, 1536  ;;  %p4057_p6 = scmp.lt.s32.totalorder %s20_s8, %s20_s8 }
  0x2c   :  { %p4053_p5 = scmp.ne.s32.totalorder %s20_s8, %s4052_s27  ;;  %p4058_p7 = scmp.lt.s32.totalorder %s4052_s27, %s4052_s27 }
  0x2e   :  { %p4059_p8 = por %p4058_p7, %p4057_p6 }
  0x30   :  { %p4060_p9 = pnand %p4059_p8, %p4053_p5 }
  0x32   :  { %4063 = shalt.err (!%p4060_p9)
}
  0x33   :  { %25 = dma.hbm_to_vmem [thread:$0]  %s4544_s0, 1536, %s20_s8, [#allocation3], %s4141_s16, %s4141_s16, %s4142_s17  }
  0x34   :  { %s4143_s29 = smov [#allocation7]   ;;  %s4144_s6 = smov [#allocation10]  }
  0x35   :  { %s41_s30 = sshll.u32 %s4143_s29, 4  ;;  %s66_s7 = sshll.u32 %s4144_s6, 4  ;;  %s42_s30 = int_to_ptr.vmem [resolvable:$true] %s41_s30  ;;  %s67_s7 = int_to_ptr.vmem [resolvable:$true] %s66_s7 }
  0x36   :  { %s4064_s11 = scalar_lea.hbm %s4546_s2, 1536 }
  0x37   :  { %p4065_p10 = scmp.ne.s32.totalorder %s4546_s2, %s4064_s11  ;;  %p4068_p11 = scmp.lt.u32.totalorder %s4064_s11, %s4546_s2 }
  0x39   :  { %p4070_p12 = pnand %p4068_p11, %p4065_p10 }
  0x3b   :  { %4073 = shalt.err (!%p4070_p12)
}
  0x3c   :  { %s4074_s0 = scalar_lea.vmem %s42_s30, 1536  ;;  %p4079_p0 = scmp.lt.s32.totalorder %s42_s30, %s42_s30 }
  0x3d   :  { %p4075_p13 = scmp.ne.s32.totalorder %s42_s30, %s4074_s0  ;;  %p4080_p1 = scmp.lt.s32.totalorder %s4074_s0, %s4074_s0 }
  0x3f   :  { %p4081_p2 = por %p4080_p1, %p4079_p0 }
  0x41   :  { %p4082_p3 = pnand %p4081_p2, %p4075_p13 }
  0x43   :  { %4085 = shalt.err (!%p4082_p3)
}
  0x44   :  { %47 = dma.hbm_to_vmem [thread:$0]  %s4546_s2, 1536, %s42_s30, [#allocation6], %s4141_s16, %s4141_s16, %s4142_s17  }
  0x45   :  { %s4086_s20 = scalar_lea.hbm %s4548_s4, 96 }
  0x46   :  { %p4087_p4 = scmp.ne.s32.totalorder %s4548_s4, %s4086_s20  ;;  %p4090_p5 = scmp.lt.u32.totalorder %s4086_s20, %s4548_s4 }
  0x48   :  { %p4092_p6 = pnand %p4090_p5, %p4087_p4 }
  0x4a   :  { %4095 = shalt.err (!%p4092_p6)
}
  0x4b   :  { %s4096_s25 = scalar_lea.vmem %s67_s7, 96  ;;  %p4101_p8 = scmp.lt.s32.totalorder %s67_s7, %s67_s7 }
  0x4c   :  { %p4097_p7 = scmp.ne.s32.totalorder %s67_s7, %s4096_s25  ;;  %p4102_p9 = scmp.lt.s32.totalorder %s4096_s25, %s4096_s25 }
  0x4e   :  { %p4103_p10 = por %p4102_p9, %p4101_p8 }
  0x50   :  { %p4104_p11 = pnand %p4103_p10, %p4097_p7 }
  0x52   :  { %4107 = shalt.err (!%p4104_p11)
}
  0x53   :  { %69 = dma.hbm_to_vmem [thread:$0]  %s4548_s4, 96, %s67_s7, [#allocation9]  }
  0x54   :  { %4130 = dma.done.wait [#allocation3], 1536  }
  0x55   :  { %4131 = vsyncadd [#allocation3], 4294965760 }
  0x56   :  { %4132 = dma.done.wait [#allocation6], 1728  }
  0x57   :  { %4133 = vsyncadd [#allocation6], 4294965568 }
  0x58   :  { %4134 = dma.done.wait [#allocation9], 36960  }
  0x59   :  { %4135 = vsyncadd [#allocation9], 4294930336  ;;  %v3498_v0 = vld [vmem:[#allocation8 + $0x4] ss:$24 sps:$4 sm:$0xff]   ;;  %v3502_v2 = vld [vmem:[#allocation8] ss:$24 sps:$4 sm:$0xff]   ;;  %v378_v36 = vlaneseq }
  0x5a   :  { %v3500_v1 = vld [vmem:[#allocation8 + $0x304] ss:$24 sps:$4 sm:$0xff]   ;;  %1881 = vmatprep.subr.bf16.mxu1 %v3498_v0  ;;  %v3503_v3 = vld [vmem:[#allocation8 + $0x300] ss:$24 sps:$4 sm:$0xff]   ;;  %v3504_v4 = vld [vmem:[#allocation8 + $0x34] ss:$24 sps:$4 sm:$0xff]  }
  0x5b   :  { %1922 = vmatprep.subr.bf16.mxu0 %v3500_v1  ;;  %1882 = vmatpush1.bf16.msra.mxu1 %v3502_v2  ;;  %v3506_v5 = vld [vmem:[#allocation8 + $0x334] ss:$24 sps:$4 sm:$0xff]   ;;  %v3508_v6 = vld [vmem:[#allocation8 + $0x30] ss:$24 sps:$4 sm:$0xff]   ;;  %v3510_v8 = vld [vmem:[#allocation8 + $0x64] ss:$24 sps:$4 sm:$0xff]  }
  0x5c   :  { %1923 = vmatpush1.bf16.msra.mxu0 %v3503_v3  ;;  %1883 = vmatprep.subr.bf16.mxu1 %v3504_v4  ;;  %v3509_v7 = vld [vmem:[#allocation8 + $0x330] ss:$24 sps:$4 sm:$0xff]   ;;  %v3512_v9 = vld [vmem:[#allocation8 + $0x364] ss:$24 sps:$4 sm:$0xff]   ;;  %v3514_v10 = vld [vmem:[#allocation8 + $0x60] ss:$24 sps:$4 sm:$0xff]  }
  0x5d   :  { %1924 = vmatprep.subr.bf16.mxu0 %v3506_v5  ;;  %v3515_v11 = vld [vmem:[#allocation8 + $0x360] ss:$24 sps:$4 sm:$0xff]   ;;  %v3516_v12 = vld [vmem:[#allocation8 + $0x94] ss:$24 sps:$4 sm:$0xff]   ;;  %v3520_v14 = vld [vmem:[#allocation8 + $0x90] ss:$24 sps:$4 sm:$0xff]  }
  0x5e   :  { %v3518_v13 = vld [vmem:[#allocation8 + $0x394] ss:$24 sps:$4 sm:$0xff]   ;;  %v3521_v15 = vld [vmem:[#allocation8 + $0x390] ss:$24 sps:$4 sm:$0xff]   ;;  %v3522_v16 = vld [vmem:[#allocation8 + $0xc4] ss:$24 sps:$4 sm:$0xff]  }
  0x5f   :  { %1884 = vmatpush1.bf16.msra.mxu1 %v3508_v6  ;;  %v3524_v17 = vld [vmem:[#allocation8 + $0x3c4] ss:$24 sps:$4 sm:$0xff]   ;;  %v3526_v18 = vld [vmem:[#allocation8 + $0xc0] ss:$24 sps:$4 sm:$0xff]   ;;  %v3528_v20 = vld [vmem:[#allocation8 + $0xf4] ss:$24 sps:$4 sm:$0xff]  }
  0x60   :  { %1925 = vmatpush1.bf16.msra.mxu0 %v3509_v7  ;;  %1885 = vmatprep.subr.bf16.mxu1 %v3510_v8  ;;  %v3527_v19 = vld [vmem:[#allocation8 + $0x3c0] ss:$24 sps:$4 sm:$0xff]   ;;  %v3530_v21 = vld [vmem:[#allocation8 + $0x3f4] ss:$24 sps:$4 sm:$0xff]   ;;  %v3532_v22 = vld [vmem:[#allocation8 + $0xf0] ss:$24 sps:$4 sm:$0xff]  }
  0x61   :  { %1926 = vmatprep.subr.bf16.mxu0 %v3512_v9  ;;  %v3533_v23 = vld [vmem:[#allocation8 + $0x3f0] ss:$24 sps:$4 sm:$0xff]   ;;  %v3534_v24 = vld [vmem:[#allocation8 + $0x124] ss:$24 sps:$4 sm:$0xff]   ;;  %v3538_v26 = vld [vmem:[#allocation8 + $0x120] ss:$24 sps:$4 sm:$0xff]  }
  0x62   :  { %v3536_v25 = vld [vmem:[#allocation8 + $0x424] ss:$24 sps:$4 sm:$0xff]   ;;  %v3539_v27 = vld [vmem:[#allocation8 + $0x420] ss:$24 sps:$4 sm:$0xff]   ;;  %v3540_v28 = vld [vmem:[#allocation8 + $0x154] ss:$24 sps:$4 sm:$0xff]  }
  0x63   :  { %1886 = vmatpush1.bf16.msra.mxu1 %v3514_v10  ;;  %v3542_v29 = vld [vmem:[#allocation8 + $0x454] ss:$24 sps:$4 sm:$0xff]   ;;  %v3544_v30 = vld [vmem:[#allocation8 + $0x150] ss:$24 sps:$4 sm:$0xff]   ;;  %v3546_v32 = vld [vmem:[#allocation8 + $0x184] ss:$24 sps:$4 sm:$0xff]  }
  0x64   :  { %1927 = vmatpush1.bf16.msra.mxu0 %v3515_v11  ;;  %1887 = vmatprep.subr.bf16.mxu1 %v3516_v12  ;;  %v3545_v31 = vld [vmem:[#allocation8 + $0x450] ss:$24 sps:$4 sm:$0xff]   ;;  %v3548_v33 = vld [vmem:[#allocation8 + $0x484] ss:$24 sps:$4 sm:$0xff]   ;;  %v3550_v34 = vld [vmem:[#allocation8 + $0x180] ss:$24 sps:$4 sm:$0xff]  }
  0x65   :  { %1928 = vmatprep.subr.bf16.mxu0 %v3518_v13  ;;  %v3551_v35 = vld [vmem:[#allocation8 + $0x480] ss:$24 sps:$4 sm:$0xff]   ;;  %v4145_v37 = vmov 1983009808   ;;  %v3552_v39 = vld [vmem:[#allocation8 + $0x1b4] ss:$24 sps:$4 sm:$0xff]  }
  0x66   :  { %v412_v38 = vunpack.c.l.s4 %v4145_v37  ;;  %v3554_v40 = vld [vmem:[#allocation8 + $0x4b4] ss:$24 sps:$4 sm:$0xff]   ;;  %v3556_v41 = vld [vmem:[#allocation8 + $0x1b0] ss:$24 sps:$4 sm:$0xff]   ;;  %v4248_v42 = vshrl.u32 %v378_v36, 7  ;;  %vm2451_vm0 = vcmask 130048  }
  0x67   :  { %1888 = vmatpush1.bf16.msra.mxu1 %v3520_v14  ;;  %v3557_v44 = vld [vmem:[#allocation8 + $0x4b0] ss:$24 sps:$4 sm:$0xff]   ;;  %v3558_v45 = vld [vmem:[#allocation8 + $0x1e4] ss:$24 sps:$4 sm:$0xff]   ;;  %v3562_v47 = vld [vmem:[#allocation8 + $0x1e0] ss:$24 sps:$4 sm:$0xff]  }
  0x68   :  { %1929 = vmatpush1.bf16.msra.mxu0 %v3521_v15  ;;  %1889 = vmatprep.subr.bf16.mxu1 %v3522_v16  ;;  %v413_v43 = vunpack.c.0.s8 %v412_v38  ;;  %v3560_v46 = vld [vmem:[#allocation8 + $0x4e4] ss:$24 sps:$4 sm:$0xff]   ;;  %v3563_v48 = vld [vmem:[#allocation8 + $0x4e0] ss:$24 sps:$4 sm:$0xff]   ;;  %v3564_v50 = vld [vmem:[#allocation8 + $0x214] ss:$24 sps:$4 sm:$0xff]  }
  0x69   :  { %1930 = vmatprep.subr.bf16.mxu0 %v3524_v17  ;;  %v3566_v51 = vld [vmem:[#allocation8 + $0x514] ss:$24 sps:$4 sm:$0xff]   ;;  %v3568_v53 = vld [vmem:[#allocation8 + $0x210] ss:$24 sps:$4 sm:$0xff]   ;;  %v3570_v57 = vld [vmem:[#allocation8 + $0x244] ss:$24 sps:$4 sm:$0xff]  }
  0x6a   :  { %v416_v49 = vsub.s32 %v413_v43, %v4248_v42  ;;  %v86_v52 = vld [vmem:[#allocation5] sm:$0xff]  ;;  %v3569_v56 = vld [vmem:[#allocation8 + $0x510] ss:$24 sps:$4 sm:$0xff]   ;;  %v3572_v58 = vld [vmem:[#allocation8 + $0x544] ss:$24 sps:$4 sm:$0xff]   ;;  %vm2656_vm1 = vcmask 1041409  }
  0x6b   :  { %1890 = vmatpush1.bf16.msra.mxu1 %v3526_v18  ;;  %v410_v55 = vcombine.high %v86_v52, %v86_v52  ;;  %v3574_v61 = vld [vmem:[#allocation8 + $0x240] ss:$24 sps:$4 sm:$0xff]   ;;  %v3576_v0 = vld [vmem:[#allocation8 + $0x274] ss:$24 sps:$4 sm:$0xff]   ;;  %v3580_v2 = vld [vmem:[#allocation8 + $0x270] ss:$24 sps:$4 sm:$0xff]  }
  0x6c   :  { %1931 = vmatpush1.bf16.msra.mxu0 %v3527_v19  ;;  %1891 = vmatprep.subr.bf16.mxu1 %v3528_v20  ;;  %v4251_v54 = vrot.slane %v86_v52, %v416_v49  ;;  %v3575_v63 = vld [vmem:[#allocation8 + $0x540] ss:$24 sps:$4 sm:$0xff]   ;;  %v3578_v1 = vld [vmem:[#allocation8 + $0x574] ss:$24 sps:$4 sm:$0xff]   ;;  %v3581_v3 = vld [vmem:[#allocation8 + $0x570] ss:$24 sps:$4 sm:$0xff]  }
  0x6d   :  { %1932 = vmatprep.subr.bf16.mxu0 %v3530_v21  ;;  %v4257_v60 = vrot.slane %v410_v55, %v416_v49  ;;  %v3582_v4 = vld [vmem:[#allocation8 + $0x2a4] ss:$24 sps:$4 sm:$0xff]   ;;  %v3586_v6 = vld [vmem:[#allocation8 + $0x2a0] ss:$24 sps:$4 sm:$0xff]   ;;  %v3588_v8 = vld [vmem:[#allocation8 + $0x2d4] ss:$24 sps:$4 sm:$0xff]  }
  0x6e   :  { %v4255_v59 = vcombine.high %v4251_v54, %v4251_v54  ;;  %v3584_v5 = vld [vmem:[#allocation8 + $0x5a4] ss:$24 sps:$4 sm:$0xff]   ;;  %v3587_v7 = vld [vmem:[#allocation8 + $0x5a0] ss:$24 sps:$4 sm:$0xff]   ;;  %v3590_v9 = vld [vmem:[#allocation8 + $0x5d4] ss:$24 sps:$4 sm:$0xff]  }
  0x6f   :  { %1892 = vmatpush1.bf16.msra.mxu1 %v3532_v22  ;;  %v4262_v62 = vcombine.high %v4257_v60, %v4257_v60  ;;  %v3592_v10 = vld [vmem:[#allocation8 + $0x2d0] ss:$24 sps:$4 sm:$0xff]   ;;  %v3597_v12 = vld [vmem:[#allocation8 + $0x604] ss:$24 sps:$4 sm:$0xff]   ;;  %v3595_v14 = vld [vmem:[#allocation8 + $0x600] ss:$24 sps:$4 sm:$0xff]  }
  0x70   :  { %1933 = vmatpush1.bf16.msra.mxu0 %v3533_v23  ;;  %1893 = vmatprep.subr.bf16.mxu1 %v3534_v24  ;;  %v3593_v11 = vld [vmem:[#allocation8 + $0x5d0] ss:$24 sps:$4 sm:$0xff]   ;;  %v3600_v13 = vld [vmem:[#allocation8 + $0xc] ss:$24 sps:$4 sm:$0xff]   ;;  %v3606_v17 = vld [vmem:[#allocation8 + $0x3c] ss:$24 sps:$4 sm:$0xff]  }
  0x71   :  { %1934 = vmatprep.subr.bf16.mxu0 %v3536_v25  ;;  %1913 = vmatprep.mubr.bf16.mxu1 %v4255_v59  ;;  %v3598_v15 = vld [vmem:[#allocation8 + $0x8] ss:$24 sps:$4 sm:$0xff]   ;;  %v3603_v16 = vld [vmem:[#allocation8 + $0x634] ss:$24 sps:$4 sm:$0xff]   ;;  %v3604_v19 = vld [vmem:[#allocation8 + $0x38] ss:$24 sps:$4 sm:$0xff]  }
  0x72   :  { %1954 = vmatprep.mubr.bf16.mxu0 %v4262_v62  ;;  %v3601_v18 = vld [vmem:[#allocation8 + $0x630] ss:$24 sps:$4 sm:$0xff]   ;;  %v3609_v20 = vld [vmem:[#allocation8 + $0x664] ss:$24 sps:$4 sm:$0xff]   ;;  %v3607_v22 = vld [vmem:[#allocation8 + $0x660] ss:$24 sps:$4 sm:$0xff]  }
  0x73   :  { %1894 = vmatpush1.bf16.msra.mxu1 %v3538_v26  ;;  %v3612_v21 = vld [vmem:[#allocation8 + $0x6c] ss:$24 sps:$4 sm:$0xff]   ;;  %v3610_v23 = vld [vmem:[#allocation8 + $0x68] ss:$24 sps:$4 sm:$0xff]   ;;  %v3618_v25 = vld [vmem:[#allocation8 + $0x9c] ss:$24 sps:$4 sm:$0xff]  }
  0x74   :  { %1935 = vmatpush1.bf16.msra.mxu0 %v3539_v27  ;;  %1895 = vmatprep.subr.bf16.mxu1 %v3540_v28  ;;  %v3615_v24 = vld [vmem:[#allocation8 + $0x694] ss:$24 sps:$4 sm:$0xff]   ;;  %v3613_v26 = vld [vmem:[#allocation8 + $0x690] ss:$24 sps:$4 sm:$0xff]   ;;  %v3621_v28 = vld [vmem:[#allocation8 + $0x6c4] ss:$24 sps:$4 sm:$0xff]  }
  0x75   :  { %1936 = vmatprep.subr.bf16.mxu0 %v3542_v29  ;;  %v3616_v27 = vld [vmem:[#allocation8 + $0x98] ss:$24 sps:$4 sm:$0xff]   ;;  %v3624_v29 = vld [vmem:[#allocation8 + $0xcc] ss:$24 sps:$4 sm:$0xff]   ;;  %v3634_v43 = vld [vmem:[#allocation8 + $0x128] ss:$24 sps:$4 sm:$0xff]  }
  0x76   :  { %v3633_v37 = vld [vmem:[#allocation8 + $0x724] ss:$24 sps:$4 sm:$0xff]   ;;  %v3651_v52 = vld [vmem:[#allocation8 + $0x7b4] ss:$24 sps:$4 sm:$0xff]   ;;  %v3649_v55 = vld [vmem:[#allocation8 + $0x7b0] ss:$24 sps:$4 sm:$0xff]  }
  0x77   :  { %1896 = vmatpush1.bf16.msra.mxu1 %v3544_v30  ;;  %v3619_v30 = vld [vmem:[#allocation8 + $0x6c0] ss:$24 sps:$4 sm:$0xff]   ;;  %v3636_v38 = vld [vmem:[#allocation8 + $0x12c] ss:$24 sps:$4 sm:$0xff]   ;;  %vm2659_vm2 = vcmask 123904   ;;  %vm2706_vm3 = vcmask 58368  }
  0x78   :  { %1937 = vmatpush1.bf16.msra.mxu0 %v3545_v31  ;;  %1897 = vmatprep.subr.bf16.mxu1 %v3546_v32  ;;  %v3622_v31 = vld [vmem:[#allocation8 + $0xc8] ss:$24 sps:$4 sm:$0xff]   ;;  %v3627_v32 = vld [vmem:[#allocation8 + $0x6f4] ss:$24 sps:$4 sm:$0xff]   ;;  %vm2716_vm4 = vcmask 8192   ;;  %s4147_s4 = smov [#allocation11]  }
  0x79   :  { %1938 = vmatprep.subr.bf16.mxu0 %v3548_v33  ;;  %v3630_v33 = vld [vmem:[#allocation8 + $0xfc] ss:$24 sps:$4 sm:$0xff]   ;;  %v3648_v49 = vld [vmem:[#allocation8 + $0x18c] ss:$24 sps:$4 sm:$0xff]   ;;  %s3120_s17 = sshll.u32 %s4147_s4, 4  ;;  %s3121_s17 = int_to_ptr.vmem [resolvable:$true] %s3120_s17 }
  0x7a   :  { %s4108_s26 = scalar_lea.vmem %s3121_s17, 32  ;;  %p4113_p13 = scmp.lt.s32.totalorder %s3121_s17, %s3121_s17 }
  0x7b   :  { %1898 = vmatpush1.bf16.msra.mxu1 %v3550_v34  ;;  %v3625_v34 = vld [vmem:[#allocation8 + $0x6f0] ss:$24 sps:$4 sm:$0xff]   ;;  %p4109_p12 = scmp.ne.s32.totalorder %s3121_s17, %s4108_s26  ;;  %p4114_p0 = scmp.lt.s32.totalorder %s4108_s26, %s4108_s26 }
  0x7c   :  { %1939 = vmatpush1.bf16.msra.mxu0 %v3551_v35  ;;  %1899 = vmatprep.subr.bf16.mxu1 %v3552_v39  ;;  %v3628_v35 = vld [vmem:[#allocation8 + $0xf8] ss:$24 sps:$4 sm:$0xff]   ;;  %v4268_v39 = vld.sshfl [vmem:[#allocation5 + $0x8] sm:$0x33 pattern:$0x76325410] }
  0x7d   :  { %1940 = vmatprep.subr.bf16.mxu0 %v3554_v40  ;;  %v4272_v40 = vcombine.high %v4268_v39, %v4268_v39  ;;  %p4115_p1 = por %p4114_p0, %p4113_p13 }
  0x7f   :  { %1900 = vmatpush1.bf16.msra.mxu1 %v3556_v41  ;;  %v3631_v41 = vld [vmem:[#allocation8 + $0x720] ss:$24 sps:$4 sm:$0xff]   ;;  %p4116_p2 = pnand %p4115_p1, %p4109_p12 }
  0x80   :  { %1941 = vmatpush1.bf16.msra.mxu0 %v3557_v44  ;;  %1901 = vmatprep.subr.bf16.mxu1 %v3558_v45  ;;  %v3639_v44 = vld [vmem:[#allocation8 + $0x754] ss:$24 sps:$4 sm:$0xff]  }
  0x81   :  { %1942 = vmatprep.subr.bf16.mxu0 %v3560_v46  ;;  %v3642_v45 = vld [vmem:[#allocation8 + $0x15c] ss:$24 sps:$4 sm:$0xff]   ;;  %v3637_v46 = vld [vmem:[#allocation8 + $0x750] ss:$24 sps:$4 sm:$0xff]  }
  0x83   :  { %1902 = vmatpush1.bf16.msra.mxu1 %v3562_v47  ;;  %v3640_v47 = vld [vmem:[#allocation8 + $0x158] ss:$24 sps:$4 sm:$0xff]  }
  0x84   :  { %1943 = vmatpush1.bf16.msra.mxu0 %v3563_v48  ;;  %1903 = vmatprep.subr.bf16.mxu1 %v3564_v50  ;;  %v3645_v48 = vld [vmem:[#allocation8 + $0x784] ss:$24 sps:$4 sm:$0xff]   ;;  %v3643_v50 = vld [vmem:[#allocation8 + $0x780] ss:$24 sps:$4 sm:$0xff]  }
  0x85   :  { %1944 = vmatprep.subr.bf16.mxu0 %v3566_v51  ;;  %v3646_v51 = vld [vmem:[#allocation8 + $0x188] ss:$24 sps:$4 sm:$0xff]  }
  0x87   :  { %1904 = vmatpush1.bf16.msra.mxu1 %v3568_v53  ;;  %v3654_v53 = vld [vmem:[#allocation8 + $0x1bc] ss:$24 sps:$4 sm:$0xff]  }
  0x88   :  { %1945 = vmatpush1.bf16.msra.mxu0 %v3569_v56  ;;  %1905 = vmatprep.subr.bf16.mxu1 %v3570_v57  ;;  %v3652_v56 = vld [vmem:[#allocation8 + $0x1b8] ss:$24 sps:$4 sm:$0xff]   ;;  %v3657_v57 = vld [vmem:[#allocation8 + $0x7e4] ss:$24 sps:$4 sm:$0xff]  }
  0x89   :  { %1946 = vmatprep.subr.bf16.mxu0 %v3572_v58  ;;  %v3660_v58 = vld [vmem:[#allocation8 + $0x1ec] ss:$24 sps:$4 sm:$0xff]  }
  0x8b   :  { %1906 = vmatpush1.bf16.msra.mxu1 %v3574_v61  ;;  %v3655_v61 = vld [vmem:[#allocation8 + $0x7e0] ss:$24 sps:$4 sm:$0xff]  }
  0x8c   :  { %1947 = vmatpush1.bf16.msra.mxu0 %v3575_v63  ;;  %1907 = vmatprep.subr.bf16.mxu1 %v3576_v0  ;;  %v3658_v63 = vld [vmem:[#allocation8 + $0x1e8] ss:$24 sps:$4 sm:$0xff]   ;;  %v3663_v0 = vld [vmem:[#allocation8 + $0x814] ss:$24 sps:$4 sm:$0xff]  }
  0x8d   :  { %1948 = vmatprep.subr.bf16.mxu0 %v3578_v1  ;;  %v3666_v1 = vld [vmem:[#allocation8 + $0x21c] ss:$24 sps:$4 sm:$0xff]  }
  0x8f   :  { %1908 = vmatpush1.bf16.msra.mxu1 %v3580_v2  ;;  %v3661_v2 = vld [vmem:[#allocation8 + $0x810] ss:$24 sps:$4 sm:$0xff]  }
  0x90   :  { %1949 = vmatpush1.bf16.msra.mxu0 %v3581_v3  ;;  %1909 = vmatprep.subr.bf16.mxu1 %v3582_v4  ;;  %v3664_v3 = vld [vmem:[#allocation8 + $0x218] ss:$24 sps:$4 sm:$0xff]   ;;  %v3669_v4 = vld [vmem:[#allocation8 + $0x844] ss:$24 sps:$4 sm:$0xff]  }
  0x91   :  { %1950 = vmatprep.subr.bf16.mxu0 %v3584_v5  ;;  %v3672_v5 = vld [vmem:[#allocation8 + $0x24c] ss:$24 sps:$4 sm:$0xff]  }
  0x93   :  { %1910 = vmatpush1.bf16.msra.mxu1 %v3586_v6  ;;  %v3667_v6 = vld [vmem:[#allocation8 + $0x840] ss:$24 sps:$4 sm:$0xff]  }
  0x94   :  { %1951 = vmatpush1.bf16.msra.mxu0 %v3587_v7  ;;  %1911 = vmatprep.subr.bf16.mxu1 %v3588_v8  ;;  %v3670_v7 = vld [vmem:[#allocation8 + $0x248] ss:$24 sps:$4 sm:$0xff]   ;;  %v3675_v8 = vld [vmem:[#allocation8 + $0x874] ss:$24 sps:$4 sm:$0xff]  }
  0x95   :  { %1952 = vmatprep.subr.bf16.mxu0 %v3590_v9  ;;  %v3678_v9 = vld [vmem:[#allocation8 + $0x27c] ss:$24 sps:$4 sm:$0xff]  }
  0x97   :  { %1912 = vmatpush1.bf16.msra.mxu1 %v3592_v10  ;;  %v3673_v10 = vld [vmem:[#allocation8 + $0x870] ss:$24 sps:$4 sm:$0xff]  }
  0x98   :  { %1953 = vmatpush1.bf16.msra.mxu0 %v3593_v11  ;;  %2004 = vmatprep.subr.bf16.mxu1 %v3600_v13  ;;  %v3676_v11 = vld [vmem:[#allocation8 + $0x278] ss:$24 sps:$4 sm:$0xff]   ;;  %v3684_v13 = vld [vmem:[#allocation8 + $0x2ac] ss:$24 sps:$4 sm:$0xff]  }
  0x99   :  { %1963 = vmatprep.subr.bf16.mxu0 %v3597_v12  ;;  %v3681_v12 = vld [vmem:[#allocation8 + $0x8a4] ss:$24 sps:$4 sm:$0xff]  }
  0x9a   :  { %1914 = vmatmul.mubr.bf16.vlgmr.msra.gmra.mrb[0].mxu1 %v4251_v54 }
  0x9b   :  { %1955 = vmatmul.mubr.bf16.vlgmr.msra.gmra.mrb[0].mxu0 %v4257_v60  ;;  %2005 = vmatpush1.bf16.msra.mxu1 %v3598_v15  ;;  %v3682_v15 = vld [vmem:[#allocation8 + $0x2a8] ss:$24 sps:$4 sm:$0xff]  }
  0x9c   :  { %1964 = vmatpush1.bf16.msra.mxu0 %v3595_v14  ;;  %2006 = vmatprep.subr.bf16.mxu1 %v3606_v17  ;;  %v3679_v14 = vld [vmem:[#allocation8 + $0x8a0] ss:$24 sps:$4 sm:$0xff]   ;;  %v3690_v17 = vld [vmem:[#allocation8 + $0x2dc] ss:$24 sps:$4 sm:$0xff]  }
  0x9d   :  { %1965 = vmatprep.subr.bf16.mxu0 %v3603_v16  ;;  %2036 = vmatprep.mubr.bf16.mxu1 %v4255_v59  ;;  %v3687_v16 = vld [vmem:[#allocation8 + $0x8d4] ss:$24 sps:$4 sm:$0xff]  }
  0x9e   :  { %1995 = vmatprep.mubr.bf16.mxu0 %v4272_v40 }
  0x9f   :  { %2007 = vmatpush1.bf16.msra.mxu1 %v3604_v19  ;;  %v3688_v19 = vld [vmem:[#allocation8 + $0x2d8] ss:$24 sps:$4 sm:$0xff]  }
  0xa0   :  { %1966 = vmatpush1.bf16.msra.mxu0 %v3601_v18  ;;  %2008 = vmatprep.subr.bf16.mxu1 %v3612_v21  ;;  %v3685_v18 = vld [vmem:[#allocation8 + $0x8d0] ss:$24 sps:$4 sm:$0xff]   ;;  %v3696_v21 = vld [vmem:[#allocation8 + $0x14] ss:$24 sps:$4 sm:$0xff]  }
  0xa1   :  { %1967 = vmatprep.subr.bf16.mxu0 %v3609_v20  ;;  %v3693_v20 = vld [vmem:[#allocation8 + $0x30c] ss:$24 sps:$4 sm:$0xff]  }
  0xa3   :  { %2009 = vmatpush1.bf16.msra.mxu1 %v3610_v23  ;;  %v3694_v23 = vld [vmem:[#allocation8 + $0x10] ss:$24 sps:$4 sm:$0xff]  }
  0xa4   :  { %1968 = vmatpush1.bf16.msra.mxu0 %v3607_v22  ;;  %2010 = vmatprep.subr.bf16.mxu1 %v3618_v25  ;;  %v3691_v22 = vld [vmem:[#allocation8 + $0x308] ss:$24 sps:$4 sm:$0xff]   ;;  %v3702_v25 = vld [vmem:[#allocation8 + $0x44] ss:$24 sps:$4 sm:$0xff]  }
  0xa5   :  { %1969 = vmatprep.subr.bf16.mxu0 %v3615_v24  ;;  %v3699_v24 = vld [vmem:[#allocation8 + $0x33c] ss:$24 sps:$4 sm:$0xff]  }
  0xa7   :  { %2011 = vmatpush1.bf16.msra.mxu1 %v3616_v27  ;;  %v3700_v27 = vld [vmem:[#allocation8 + $0x40] ss:$24 sps:$4 sm:$0xff]  }
  0xa8   :  { %1970 = vmatpush1.bf16.msra.mxu0 %v3613_v26  ;;  %2012 = vmatprep.subr.bf16.mxu1 %v3624_v29  ;;  %v3697_v26 = vld [vmem:[#allocation8 + $0x338] ss:$24 sps:$4 sm:$0xff]   ;;  %v3708_v29 = vld [vmem:[#allocation8 + $0x74] ss:$24 sps:$4 sm:$0xff]  }
  0xa9   :  { %1971 = vmatprep.subr.bf16.mxu0 %v3621_v28  ;;  %v3705_v28 = vld [vmem:[#allocation8 + $0x36c] ss:$24 sps:$4 sm:$0xff]  }
  0xab   :  { %2013 = vmatpush1.bf16.msra.mxu1 %v3622_v31  ;;  %v3706_v31 = vld [vmem:[#allocation8 + $0x70] ss:$24 sps:$4 sm:$0xff]  }
  0xac   :  { %1972 = vmatpush1.bf16.msra.mxu0 %v3619_v30  ;;  %2014 = vmatprep.subr.bf16.mxu1 %v3630_v33  ;;  %v3703_v30 = vld [vmem:[#allocation8 + $0x368] ss:$24 sps:$4 sm:$0xff]   ;;  %v3714_v33 = vld [vmem:[#allocation8 + $0xa4] ss:$24 sps:$4 sm:$0xff]  }
  0xad   :  { %1973 = vmatprep.subr.bf16.mxu0 %v3627_v32  ;;  %v3711_v32 = vld [vmem:[#allocation8 + $0x39c] ss:$24 sps:$4 sm:$0xff]  }
  0xaf   :  { %2015 = vmatpush1.bf16.msra.mxu1 %v3628_v35  ;;  %v3712_v35 = vld [vmem:[#allocation8 + $0xa0] ss:$24 sps:$4 sm:$0xff]  }
  0xb0   :  { %1974 = vmatpush1.bf16.msra.mxu0 %v3625_v34  ;;  %2016 = vmatprep.subr.bf16.mxu1 %v3636_v38  ;;  %v3709_v34 = vld [vmem:[#allocation8 + $0x398] ss:$24 sps:$4 sm:$0xff]   ;;  %v3720_v38 = vld [vmem:[#allocation8 + $0xd4] ss:$24 sps:$4 sm:$0xff]  }
  0xb1   :  { %1975 = vmatprep.subr.bf16.mxu0 %v3633_v37  ;;  %v3717_v37 = vld [vmem:[#allocation8 + $0x3cc] ss:$24 sps:$4 sm:$0xff]  }
  0xb3   :  { %2017 = vmatpush1.bf16.msra.mxu1 %v3634_v43  ;;  %v3726_v43 = vld [vmem:[#allocation8 + $0x104] ss:$24 sps:$4 sm:$0xff]  }
  0xb4   :  { %1976 = vmatpush1.bf16.msra.mxu0 %v3631_v41  ;;  %2018 = vmatprep.subr.bf16.mxu1 %v3642_v45  ;;  %v3723_v41 = vld [vmem:[#allocation8 + $0x3fc] ss:$24 sps:$4 sm:$0xff]   ;;  %v3724_v45 = vld [vmem:[#allocation8 + $0x100] ss:$24 sps:$4 sm:$0xff]  }
  0xb5   :  { %1977 = vmatprep.subr.bf16.mxu0 %v3639_v44  ;;  %v3721_v44 = vld [vmem:[#allocation8 + $0x3f8] ss:$24 sps:$4 sm:$0xff]  }
  0xb7   :  { %2019 = vmatpush1.bf16.msra.mxu1 %v3640_v47  ;;  %v3732_v47 = vld [vmem:[#allocation8 + $0x134] ss:$24 sps:$4 sm:$0xff]  }
  0xb8   :  { %1978 = vmatpush1.bf16.msra.mxu0 %v3637_v46  ;;  %2020 = vmatprep.subr.bf16.mxu1 %v3648_v49  ;;  %v3729_v46 = vld [vmem:[#allocation8 + $0x42c] ss:$24 sps:$4 sm:$0xff]   ;;  %v3730_v49 = vld [vmem:[#allocation8 + $0x130] ss:$24 sps:$4 sm:$0xff]  }
  0xb9   :  { %1979 = vmatprep.subr.bf16.mxu0 %v3645_v48  ;;  %v3727_v48 = vld [vmem:[#allocation8 + $0x428] ss:$24 sps:$4 sm:$0xff]  }
  0xbb   :  { %2021 = vmatpush1.bf16.msra.mxu1 %v3646_v51  ;;  %v3738_v51 = vld [vmem:[#allocation8 + $0x164] ss:$24 sps:$4 sm:$0xff]  }
  0xbc   :  { %1980 = vmatpush1.bf16.msra.mxu0 %v3643_v50  ;;  %2022 = vmatprep.subr.bf16.mxu1 %v3654_v53  ;;  %v3735_v50 = vld [vmem:[#allocation8 + $0x45c] ss:$24 sps:$4 sm:$0xff]   ;;  %v3736_v53 = vld [vmem:[#allocation8 + $0x160] ss:$24 sps:$4 sm:$0xff]  }
  0xbd   :  { %1981 = vmatprep.subr.bf16.mxu0 %v3651_v52  ;;  %v3733_v52 = vld [vmem:[#allocation8 + $0x458] ss:$24 sps:$4 sm:$0xff]  }
  0xbf   :  { %2023 = vmatpush1.bf16.msra.mxu1 %v3652_v56  ;;  %v3744_v56 = vld [vmem:[#allocation8 + $0x194] ss:$24 sps:$4 sm:$0xff]  }
  0xc0   :  { %1982 = vmatpush1.bf16.msra.mxu0 %v3649_v55  ;;  %2024 = vmatprep.subr.bf16.mxu1 %v3660_v58  ;;  %v3741_v55 = vld [vmem:[#allocation8 + $0x48c] ss:$24 sps:$4 sm:$0xff]   ;;  %v3742_v58 = vld [vmem:[#allocation8 + $0x190] ss:$24 sps:$4 sm:$0xff]  }
  0xc1   :  { %1983 = vmatprep.subr.bf16.mxu0 %v3657_v57  ;;  %v3739_v57 = vld [vmem:[#allocation8 + $0x488] ss:$24 sps:$4 sm:$0xff]  }
  0xc3   :  { %2025 = vmatpush1.bf16.msra.mxu1 %v3658_v63  ;;  %v3750_v63 = vld [vmem:[#allocation8 + $0x1c4] ss:$24 sps:$4 sm:$0xff]  }
  0xc4   :  { %1984 = vmatpush1.bf16.msra.mxu0 %v3655_v61  ;;  %2026 = vmatprep.subr.bf16.mxu1 %v3666_v1  ;;  %v3747_v61 = vld [vmem:[#allocation8 + $0x4bc] ss:$24 sps:$4 sm:$0xff]   ;;  %v3748_v1 = vld [vmem:[#allocation8 + $0x1c0] ss:$24 sps:$4 sm:$0xff]  }
  0xc5   :  { %1985 = vmatprep.subr.bf16.mxu0 %v3663_v0  ;;  %v3745_v0 = vld [vmem:[#allocation8 + $0x4b8] ss:$24 sps:$4 sm:$0xff]  }
  0xc7   :  { %2027 = vmatpush1.bf16.msra.mxu1 %v3664_v3  ;;  %v3756_v3 = vld [vmem:[#allocation8 + $0x1f4] ss:$24 sps:$4 sm:$0xff]  }
  0xc8   :  { %1986 = vmatpush1.bf16.msra.mxu0 %v3661_v2  ;;  %2028 = vmatprep.subr.bf16.mxu1 %v3672_v5  ;;  %v3753_v2 = vld [vmem:[#allocation8 + $0x4ec] ss:$24 sps:$4 sm:$0xff]   ;;  %v3754_v5 = vld [vmem:[#allocation8 + $0x1f0] ss:$24 sps:$4 sm:$0xff]  }
  0xc9   :  { %1987 = vmatprep.subr.bf16.mxu0 %v3669_v4  ;;  %v3751_v4 = vld [vmem:[#allocation8 + $0x4e8] ss:$24 sps:$4 sm:$0xff]  }
  0xcb   :  { %2029 = vmatpush1.bf16.msra.mxu1 %v3670_v7  ;;  %v3762_v7 = vld [vmem:[#allocation8 + $0x224] ss:$24 sps:$4 sm:$0xff]  }
  0xcc   :  { %1988 = vmatpush1.bf16.msra.mxu0 %v3667_v6  ;;  %2030 = vmatprep.subr.bf16.mxu1 %v3678_v9  ;;  %v3759_v6 = vld [vmem:[#allocation8 + $0x51c] ss:$24 sps:$4 sm:$0xff]   ;;  %v3760_v9 = vld [vmem:[#allocation8 + $0x220] ss:$24 sps:$4 sm:$0xff]  }
  0xcd   :  { %1989 = vmatprep.subr.bf16.mxu0 %v3675_v8  ;;  %v3757_v8 = vld [vmem:[#allocation8 + $0x518] ss:$24 sps:$4 sm:$0xff]  }
  0xcf   :  { %2031 = vmatpush1.bf16.msra.mxu1 %v3676_v11  ;;  %v3768_v11 = vld [vmem:[#allocation8 + $0x254] ss:$24 sps:$4 sm:$0xff]  }
  0xd0   :  { %1990 = vmatpush1.bf16.msra.mxu0 %v3673_v10  ;;  %2032 = vmatprep.subr.bf16.mxu1 %v3684_v13  ;;  %v3765_v10 = vld [vmem:[#allocation8 + $0x54c] ss:$24 sps:$4 sm:$0xff]   ;;  %v3766_v13 = vld [vmem:[#allocation8 + $0x250] ss:$24 sps:$4 sm:$0xff]  }
  0xd1   :  { %1991 = vmatprep.subr.bf16.mxu0 %v3681_v12  ;;  %v3763_v12 = vld [vmem:[#allocation8 + $0x548] ss:$24 sps:$4 sm:$0xff]  }
  0xd3   :  { %2033 = vmatpush1.bf16.msra.mxu1 %v3682_v15  ;;  %v3774_v15 = vld [vmem:[#allocation8 + $0x284] ss:$24 sps:$4 sm:$0xff]  }
  0xd4   :  { %1992 = vmatpush1.bf16.msra.mxu0 %v3679_v14  ;;  %2034 = vmatprep.subr.bf16.mxu1 %v3690_v17  ;;  %v3771_v14 = vld [vmem:[#allocation8 + $0x57c] ss:$24 sps:$4 sm:$0xff]   ;;  %v3772_v17 = vld [vmem:[#allocation8 + $0x280] ss:$24 sps:$4 sm:$0xff]  }
  0xd5   :  { %1993 = vmatprep.subr.bf16.mxu0 %v3687_v16  ;;  %v3769_v16 = vld [vmem:[#allocation8 + $0x578] ss:$24 sps:$4 sm:$0xff]  }
  0xd7   :  { %2035 = vmatpush1.bf16.msra.mxu1 %v3688_v19  ;;  %v3780_v19 = vld [vmem:[#allocation8 + $0x2b4] ss:$24 sps:$4 sm:$0xff]  }
  0xd8   :  { %1994 = vmatpush1.bf16.msra.mxu0 %v3685_v18  ;;  %2045 = vmatprep.subr.bf16.mxu1 %v3693_v20  ;;  %v3777_v18 = vld [vmem:[#allocation8 + $0x5ac] ss:$24 sps:$4 sm:$0xff]   ;;  %v3775_v20 = vld [vmem:[#allocation8 + $0x5a8] ss:$24 sps:$4 sm:$0xff]  }
  0xd9   :  { %2127 = vmatprep.subr.bf16.mxu0 %v3696_v21  ;;  %v3778_v21 = vld [vmem:[#allocation8 + $0x2b0] ss:$24 sps:$4 sm:$0xff]  }
  0xda   :  { %2037 = vmatmul.mubr.bf16.vlgmr.msra.gmra.mrb[4].mxu1 %v4251_v54 }
  0xdb   :  { %1996 = vmatmul.mubr.bf16.vlgmr.msra.gmra.mrb[0].mxu0 %v4268_v39  ;;  %2046 = vmatpush1.bf16.msra.mxu1 %v3691_v22  ;;  %v3715_v39 = vld [vmem:[#allocation8 + $0x3c8] ss:$24 sps:$4 sm:$0xff]   ;;  %v3783_v22 = vld [vmem:[#allocation8 + $0x5dc] ss:$24 sps:$4 sm:$0xff]  }
  0xdc   :  { %2128 = vmatpush1.bf16.msra.mxu0 %v3694_v23  ;;  %2047 = vmatprep.subr.bf16.mxu1 %v3699_v24  ;;  %v3786_v23 = vld [vmem:[#allocation8 + $0x2e4] ss:$24 sps:$4 sm:$0xff]   ;;  %v3781_v24 = vld [vmem:[#allocation8 + $0x5d8] ss:$24 sps:$4 sm:$0xff]  }
  0xdd   :  { %2129 = vmatprep.subr.bf16.mxu0 %v3702_v25  ;;  %2077 = vmatprep.mubr.bf16.mxu1 %v4262_v62  ;;  %v3784_v25 = vld [vmem:[#allocation8 + $0x2e0] ss:$24 sps:$4 sm:$0xff]  }
  0xde   :  { %2159 = vmatprep.mubr.bf16.mxu0 %v4255_v59  ;;  %v3718_v59 = vld [vmem:[#allocation8 + $0xd0] ss:$24 sps:$4 sm:$0xff]  }
  0xdf   :  { %2048 = vmatpush1.bf16.msra.mxu1 %v3697_v26  ;;  %v3789_v26 = vld [vmem:[#allocation8 + $0x60c] ss:$24 sps:$4 sm:$0xff]  }
  0xe0   :  { %2130 = vmatpush1.bf16.msra.mxu0 %v3700_v27  ;;  %2049 = vmatprep.subr.bf16.mxu1 %v3705_v28  ;;  %v3792_v27 = vld [vmem:[#allocation8 + $0x314] ss:$24 sps:$4 sm:$0xff]   ;;  %v3787_v28 = vld [vmem:[#allocation8 + $0x608] ss:$24 sps:$4 sm:$0xff]  }
  0xe1   :  { %2131 = vmatprep.subr.bf16.mxu0 %v3708_v29  ;;  %v3790_v29 = vld [vmem:[#allocation8 + $0x310] ss:$24 sps:$4 sm:$0xff]  }
  0xe3   :  { %2050 = vmatpush1.bf16.msra.mxu1 %v3703_v30  ;;  %v3795_v30 = vld [vmem:[#allocation8 + $0x63c] ss:$24 sps:$4 sm:$0xff]  }
  0xe4   :  { %2132 = vmatpush1.bf16.msra.mxu0 %v3706_v31  ;;  %2051 = vmatprep.subr.bf16.mxu1 %v3711_v32  ;;  %v3798_v31 = vld [vmem:[#allocation8 + $0x344] ss:$24 sps:$4 sm:$0xff]   ;;  %v3793_v32 = vld [vmem:[#allocation8 + $0x638] ss:$24 sps:$4 sm:$0xff]  }
  0xe5   :  { %2133 = vmatprep.subr.bf16.mxu0 %v3714_v33  ;;  %v3796_v33 = vld [vmem:[#allocation8 + $0x340] ss:$24 sps:$4 sm:$0xff]  }
  0xe7   :  { %2052 = vmatpush1.bf16.msra.mxu1 %v3709_v34  ;;  %v3801_v34 = vld [vmem:[#allocation8 + $0x66c] ss:$24 sps:$4 sm:$0xff]  }
  0xe8   :  { %2134 = vmatpush1.bf16.msra.mxu0 %v3712_v35  ;;  %2053 = vmatprep.subr.bf16.mxu1 %v3717_v37  ;;  %v3804_v35 = vld [vmem:[#allocation8 + $0x374] ss:$24 sps:$4 sm:$0xff]   ;;  %v3799_v37 = vld [vmem:[#allocation8 + $0x668] ss:$24 sps:$4 sm:$0xff]  }
  0xe9   :  { %2135 = vmatprep.subr.bf16.mxu0 %v3720_v38  ;;  %v3802_v38 = vld [vmem:[#allocation8 + $0x370] ss:$24 sps:$4 sm:$0xff]  }
  0xeb   :  { %2054 = vmatpush1.bf16.msra.mxu1 %v3715_v39  ;;  %v3807_v39 = vld [vmem:[#allocation8 + $0x69c] ss:$24 sps:$4 sm:$0xff]  }
  0xec   :  { %2136 = vmatpush1.bf16.msra.mxu0 %v3718_v59  ;;  %2055 = vmatprep.subr.bf16.mxu1 %v3723_v41  ;;  %v3810_v59 = vld [vmem:[#allocation8 + $0x3a4] ss:$24 sps:$4 sm:$0xff]   ;;  %v3808_v41 = vld [vmem:[#allocation8 + $0x3a0] ss:$24 sps:$4 sm:$0xff]  }
  0xed   :  { %2137 = vmatprep.subr.bf16.mxu0 %v3726_v43  ;;  %v3813_v43 = vld [vmem:[#allocation8 + $0x6cc] ss:$24 sps:$4 sm:$0xff]  }
  0xef   :  { %2056 = vmatpush1.bf16.msra.mxu1 %v3721_v44  ;;  %v3816_v44 = vld [vmem:[#allocation8 + $0x3d4] ss:$24 sps:$4 sm:$0xff]  }
  0xf0   :  { %2138 = vmatpush1.bf16.msra.mxu0 %v3724_v45  ;;  %2057 = vmatprep.subr.bf16.mxu1 %v3729_v46  ;;  %v3811_v45 = vld [vmem:[#allocation8 + $0x6c8] ss:$24 sps:$4 sm:$0xff]   ;;  %v3819_v46 = vld [vmem:[#allocation8 + $0x6fc] ss:$24 sps:$4 sm:$0xff]  }
  0xf1   :  { %2139 = vmatprep.subr.bf16.mxu0 %v3732_v47  ;;  %v3822_v47 = vld [vmem:[#allocation8 + $0x404] ss:$24 sps:$4 sm:$0xff]  }
  0xf3   :  { %2058 = vmatpush1.bf16.msra.mxu1 %v3727_v48  ;;  %v3817_v48 = vld [vmem:[#allocation8 + $0x6f8] ss:$24 sps:$4 sm:$0xff]  }
  0xf4   :  { %2140 = vmatpush1.bf16.msra.mxu0 %v3730_v49  ;;  %2059 = vmatprep.subr.bf16.mxu1 %v3735_v50  ;;  %v3820_v49 = vld [vmem:[#allocation8 + $0x400] ss:$24 sps:$4 sm:$0xff]   ;;  %v3825_v50 = vld [vmem:[#allocation8 + $0x72c] ss:$24 sps:$4 sm:$0xff]  }
  0xf5   :  { %2141 = vmatprep.subr.bf16.mxu0 %v3738_v51  ;;  %v3828_v51 = vld [vmem:[#allocation8 + $0x434] ss:$24 sps:$4 sm:$0xff]  }
  0xf7   :  { %2060 = vmatpush1.bf16.msra.mxu1 %v3733_v52  ;;  %v3823_v52 = vld [vmem:[#allocation8 + $0x728] ss:$24 sps:$4 sm:$0xff]  }
  0xf8   :  { %2142 = vmatpush1.bf16.msra.mxu0 %v3736_v53  ;;  %2061 = vmatprep.subr.bf16.mxu1 %v3741_v55  ;;  %v3826_v53 = vld [vmem:[#allocation8 + $0x430] ss:$24 sps:$4 sm:$0xff]   ;;  %v3831_v55 = vld [vmem:[#allocation8 + $0x75c] ss:$24 sps:$4 sm:$0xff]  }
  0xf9   :  { %2143 = vmatprep.subr.bf16.mxu0 %v3744_v56  ;;  %v3834_v56 = vld [vmem:[#allocation8 + $0x464] ss:$24 sps:$4 sm:$0xff]  }
  0xfb   :  { %2062 = vmatpush1.bf16.msra.mxu1 %v3739_v57  ;;  %v3829_v57 = vld [vmem:[#allocation8 + $0x758] ss:$24 sps:$4 sm:$0xff]  }
  0xfc   :  { %2144 = vmatpush1.bf16.msra.mxu0 %v3742_v58  ;;  %2063 = vmatprep.subr.bf16.mxu1 %v3747_v61  ;;  %v3832_v58 = vld [vmem:[#allocation8 + $0x460] ss:$24 sps:$4 sm:$0xff]   ;;  %v3837_v61 = vld [vmem:[#allocation8 + $0x78c] ss:$24 sps:$4 sm:$0xff]  }
  0xfd   :  { %2145 = vmatprep.subr.bf16.mxu0 %v3750_v63  ;;  %v3840_v63 = vld [vmem:[#allocation8 + $0x494] ss:$24 sps:$4 sm:$0xff]  }
  0xff   :  { %2064 = vmatpush1.bf16.msra.mxu1 %v3745_v0  ;;  %v3835_v0 = vld [vmem:[#allocation8 + $0x788] ss:$24 sps:$4 sm:$0xff]  }
 0x100   :  { %2146 = vmatpush1.bf16.msra.mxu0 %v3748_v1  ;;  %2065 = vmatprep.subr.bf16.mxu1 %v3753_v2  ;;  %v3838_v1 = vld [vmem:[#allocation8 + $0x490] ss:$24 sps:$4 sm:$0xff]   ;;  %v3843_v2 = vld [vmem:[#allocation8 + $0x7bc] ss:$24 sps:$4 sm:$0xff]  }
 0x101   :  { %2147 = vmatprep.subr.bf16.mxu0 %v3756_v3  ;;  %v3846_v3 = vld [vmem:[#allocation8 + $0x4c4] ss:$24 sps:$4 sm:$0xff]  }
 0x103   :  { %2066 = vmatpush1.bf16.msra.mxu1 %v3751_v4  ;;  %v3841_v4 = vld [vmem:[#allocation8 + $0x7b8] ss:$24 sps:$4 sm:$0xff]  }
 0x104   :  { %2148 = vmatpush1.bf16.msra.mxu0 %v3754_v5  ;;  %2067 = vmatprep.subr.bf16.mxu1 %v3759_v6  ;;  %v3844_v5 = vld [vmem:[#allocation8 + $0x4c0] ss:$24 sps:$4 sm:$0xff]   ;;  %v3849_v6 = vld [vmem:[#allocation8 + $0x7ec] ss:$24 sps:$4 sm:$0xff]  }
 0x105   :  { %2149 = vmatprep.subr.bf16.mxu0 %v3762_v7  ;;  %v3852_v7 = vld [vmem:[#allocation8 + $0x4f4] ss:$24 sps:$4 sm:$0xff]  }
 0x107   :  { %2068 = vmatpush1.bf16.msra.mxu1 %v3757_v8  ;;  %v3847_v8 = vld [vmem:[#allocation8 + $0x7e8] ss:$24 sps:$4 sm:$0xff]  }
 0x108   :  { %2150 = vmatpush1.bf16.msra.mxu0 %v3760_v9  ;;  %2069 = vmatprep.subr.bf16.mxu1 %v3765_v10  ;;  %v3850_v9 = vld [vmem:[#allocation8 + $0x4f0] ss:$24 sps:$4 sm:$0xff]   ;;  %v3855_v10 = vld [vmem:[#allocation8 + $0x81c] ss:$24 sps:$4 sm:$0xff]  }
 0x109   :  { %2151 = vmatprep.subr.bf16.mxu0 %v3768_v11  ;;  %v3858_v11 = vld [vmem:[#allocation8 + $0x524] ss:$24 sps:$4 sm:$0xff]  }
 0x10b   :  { %2070 = vmatpush1.bf16.msra.mxu1 %v3763_v12  ;;  %v3853_v12 = vld [vmem:[#allocation8 + $0x818] ss:$24 sps:$4 sm:$0xff]  }
 0x10c   :  { %2152 = vmatpush1.bf16.msra.mxu0 %v3766_v13  ;;  %2071 = vmatprep.subr.bf16.mxu1 %v3771_v14  ;;  %v3856_v13 = vld [vmem:[#allocation8 + $0x520] ss:$24 sps:$4 sm:$0xff]   ;;  %v3861_v14 = vld [vmem:[#allocation8 + $0x84c] ss:$24 sps:$4 sm:$0xff]  }
 0x10d   :  { %2153 = vmatprep.subr.bf16.mxu0 %v3774_v15  ;;  %v3864_v15 = vld [vmem:[#allocation8 + $0x554] ss:$24 sps:$4 sm:$0xff]  }
 0x10f   :  { %2072 = vmatpush1.bf16.msra.mxu1 %v3769_v16  ;;  %v3859_v16 = vld [vmem:[#allocation8 + $0x848] ss:$24 sps:$4 sm:$0xff]  }
 0x110   :  { %2154 = vmatpush1.bf16.msra.mxu0 %v3772_v17  ;;  %2073 = vmatprep.subr.bf16.mxu1 %v3777_v18  ;;  %v3862_v17 = vld [vmem:[#allocation8 + $0x550] ss:$24 sps:$4 sm:$0xff]   ;;  %v3867_v18 = vld [vmem:[#allocation8 + $0x87c] ss:$24 sps:$4 sm:$0xff]  }
 0x111   :  { %2155 = vmatprep.subr.bf16.mxu0 %v3780_v19  ;;  %v3870_v19 = vld [vmem:[#allocation8 + $0x584] ss:$24 sps:$4 sm:$0xff]  }
 0x113   :  { %2074 = vmatpush1.bf16.msra.mxu1 %v3775_v20  ;;  %v3865_v20 = vld [vmem:[#allocation8 + $0x878] ss:$24 sps:$4 sm:$0xff]  }
 0x114   :  { %2156 = vmatpush1.bf16.msra.mxu0 %v3778_v21  ;;  %2075 = vmatprep.subr.bf16.mxu1 %v3783_v22  ;;  %v3868_v21 = vld [vmem:[#allocation8 + $0x580] ss:$24 sps:$4 sm:$0xff]   ;;  %v3873_v22 = vld [vmem:[#allocation8 + $0x8ac] ss:$24 sps:$4 sm:$0xff]  }
 0x115   :  { %2157 = vmatprep.subr.bf16.mxu0 %v3786_v23  ;;  %v3876_v23 = vld [vmem:[#allocation8 + $0x5b4] ss:$24 sps:$4 sm:$0xff]  }
 0x117   :  { %2076 = vmatpush1.bf16.msra.mxu1 %v3781_v24  ;;  %v3871_v24 = vld [vmem:[#allocation8 + $0x8a8] ss:$24 sps:$4 sm:$0xff]  }
 0x118   :  { %2158 = vmatpush1.bf16.msra.mxu0 %v3784_v25  ;;  %2086 = vmatprep.subr.bf16.mxu1 %v3789_v26  ;;  %v3874_v25 = vld [vmem:[#allocation8 + $0x5b0] ss:$24 sps:$4 sm:$0xff]   ;;  %v3879_v26 = vld [vmem:[#allocation8 + $0x8dc] ss:$24 sps:$4 sm:$0xff]  }
 0x119   :  { %2168 = vmatprep.subr.bf16.mxu0 %v3792_v27  ;;  %v3882_v27 = vld [vmem:[#allocation8 + $0x5e4] ss:$24 sps:$4 sm:$0xff]  }
 0x11a   :  { %2078 = vmatmul.mubr.bf16.vlgmr.msra.gmra.mrb[4].mxu1 %v4257_v60 }
 0x11b   :  { %2160 = vmatmul.mubr.bf16.vlgmr.msra.gmra.mrb[4].mxu0 %v4251_v54  ;;  %2087 = vmatpush1.bf16.msra.mxu1 %v3787_v28  ;;  %v3805_v54 = vld [vmem:[#allocation8 + $0x698] ss:$24 sps:$4 sm:$0xff]  }
 0x11c   :  { %2169 = vmatpush1.bf16.msra.mxu0 %v3790_v29  ;;  %2088 = vmatprep.subr.bf16.mxu1 %v3795_v30  ;;  %v3877_v28 = vld [vmem:[#allocation8 + $0x8d8] ss:$24 sps:$4 sm:$0xff]   ;;  %v3885_v30 = vld [vmem:[#allocation8 + $0x614] ss:$24 sps:$4 sm:$0xff]  }
 0x11d   :  { %2170 = vmatprep.subr.bf16.mxu0 %v3798_v31  ;;  %2118 = vmatprep.mubr.bf16.mxu1 %v4272_v40  ;;  %v3880_v29 = vld [vmem:[#allocation8 + $0x5e0] ss:$24 sps:$4 sm:$0xff]   ;;  %v3933_v31 = vld [vmem:[#allocation7 + $0x4] ss:$24 sps:$4 sm:$0xff]  }
 0x11e   :  { %2200 = vmatprep.mubr.bf16.mxu0 %v4262_v62  ;;  %v3814_v62 = vld [vmem:[#allocation8 + $0x3d0] ss:$24 sps:$4 sm:$0xff]  }
 0x11f   :  { %2089 = vmatpush1.bf16.msra.mxu1 %v3793_v32  ;;  %v4283_v32 = vld [vmem:[#allocation2] sm:$0xff] }
 0x120   :  { %2171 = vmatpush1.bf16.msra.mxu0 %v3796_v33  ;;  %2090 = vmatprep.subr.bf16.mxu1 %v3801_v34  ;;  %v4285_v33 = vld [vmem:[#allocation2 + $0x18] sm:$0xff] }
 0x121   :  { %2172 = vmatprep.subr.bf16.mxu0 %v3804_v35  ;;  %v3883_v34 = vld [vmem:[#allocation8 + $0x610] ss:$24 sps:$4 sm:$0xff]   ;;  %v3888_v35 = vld [vmem:[#allocation8 + $0x644] ss:$24 sps:$4 sm:$0xff]  }
 0x123   :  { %2091 = vmatpush1.bf16.msra.mxu1 %v3799_v37  ;;  %v3421_v37 = vcombine.high %v4283_v32, %v4285_v33 }
 0x124   :  { %2173 = vmatpush1.bf16.msra.mxu0 %v3802_v38  ;;  %2092 = vmatprep.subr.bf16.mxu1 %v3807_v39  ;;  %v4289_v38 = vld.sshfl [vmem:[#allocation5 + $0x8] sm:$0x33 pattern:$0x76325410]  ;;  %v3886_v39 = vld [vmem:[#allocation8 + $0x640] ss:$24 sps:$4 sm:$0xff]  }
 0x125   :  { %2174 = vmatprep.subr.bf16.mxu0 %v3810_v59  ;;  %v3891_v59 = vld [vmem:[#allocation8 + $0x674] ss:$24 sps:$4 sm:$0xff]  }
 0x127   :  { %2093 = vmatpush1.bf16.msra.mxu1 %v3805_v54  ;;  %v3931_v54 = vld [vmem:[#allocation7] ss:$24 sps:$4 sm:$0xff]  }
 0x128   :  { %2175 = vmatpush1.bf16.msra.mxu0 %v3808_v41  ;;  %2094 = vmatprep.subr.bf16.mxu1 %v3813_v43  ;;  %v3938_v41 = vld [vmem:[#allocation7 + $0xc] ss:$24 sps:$4 sm:$0xff]   ;;  %v3889_v43 = vld [vmem:[#allocation8 + $0x670] ss:$24 sps:$4 sm:$0xff]  }
 0x129   :  { %2176 = vmatprep.subr.bf16.mxu0 %v3816_v44  ;;  %v3894_v44 = vld [vmem:[#allocation8 + $0x6a4] ss:$24 sps:$4 sm:$0xff]  }
 0x12b   :  { %2095 = vmatpush1.bf16.msra.mxu1 %v3811_v45  ;;  %v4294_v45 = vld [vmem:[#allocation2 + $0x8] sm:$0xff] }
 0x12c   :  { %2177 = vmatpush1.bf16.msra.mxu0 %v3814_v62  ;;  %2096 = vmatprep.subr.bf16.mxu1 %v3819_v46  ;;  %v4296_v62 = vld [vmem:[#allocation2 + $0x20] sm:$0xff] }
 0x12d   :  { %2178 = vmatprep.subr.bf16.mxu0 %v3822_v47  ;;  %v3897_v46 = vld [vmem:[#allocation8 + $0x6d4] ss:$24 sps:$4 sm:$0xff]   ;;  %v3936_v47 = vld [vmem:[#allocation7 + $0x8] ss:$24 sps:$4 sm:$0xff]  }
 0x12f   :  { %2097 = vmatpush1.bf16.msra.mxu1 %v3817_v48  ;;  %v3423_v48 = vcombine.high %v4294_v45, %v4296_v62 }
 0x130   :  { %2179 = vmatpush1.bf16.msra.mxu0 %v3820_v49  ;;  %2098 = vmatprep.subr.bf16.mxu1 %v3825_v50  ;;  %v3943_v49 = vld [vmem:[#allocation7 + $0x14] ss:$24 sps:$4 sm:$0xff]   ;;  %v3895_v50 = vld [vmem:[#allocation8 + $0x6d0] ss:$24 sps:$4 sm:$0xff]  }
 0x131   :  { %2180 = vmatprep.subr.bf16.mxu0 %v3828_v51  ;;  %v3900_v51 = vld [vmem:[#allocation8 + $0x704] ss:$24 sps:$4 sm:$0xff]  }
 0x133   :  { %2099 = vmatpush1.bf16.msra.mxu1 %v3823_v52  ;;  %v3898_v52 = vld [vmem:[#allocation8 + $0x700] ss:$24 sps:$4 sm:$0xff]  }
 0x134   :  { %2181 = vmatpush1.bf16.msra.mxu0 %v3826_v53  ;;  %2100 = vmatprep.subr.bf16.mxu1 %v3831_v55  ;;  %v3903_v53 = vld [vmem:[#allocation8 + $0x734] ss:$24 sps:$4 sm:$0xff]  }
 0x135   :  { %2182 = vmatprep.subr.bf16.mxu0 %v3834_v56 }
 0x137   :  { %2101 = vmatpush1.bf16.msra.mxu1 %v3829_v57  ;;  %v4306_v57 = vld [vmem:[#allocation2 + $0x10] sm:$0xff] }
 0x138   :  { %2183 = vmatpush1.bf16.msra.mxu0 %v3832_v58  ;;  %2102 = vmatprep.subr.bf16.mxu1 %v3837_v61  ;;  %v4308_v58 = vld [vmem:[#allocation2 + $0x28] sm:$0xff]  ;;  %v3901_v61 = vld [vmem:[#allocation8 + $0x730] ss:$24 sps:$4 sm:$0xff]  }
 0x139   :  { %2184 = vmatprep.subr.bf16.mxu0 %v3840_v63 }
 0x13b   :  { %2103 = vmatpush1.bf16.msra.mxu1 %v3835_v0  ;;  %v3422_v0 = vcombine.low %v4294_v45, %v4296_v62 }
 0x13c   :  { %2185 = vmatpush1.bf16.msra.mxu0 %v3838_v1  ;;  %2104 = vmatprep.subr.bf16.mxu1 %v3843_v2  ;;  %v3906_v1 = vld [vmem:[#allocation8 + $0x764] ss:$24 sps:$4 sm:$0xff]  }
 0x13d   :  { %2186 = vmatprep.subr.bf16.mxu0 %v3846_v3  ;;  %v3941_v3 = vld [vmem:[#allocation7 + $0x10] ss:$24 sps:$4 sm:$0xff]  }
 0x13f   :  { %2105 = vmatpush1.bf16.msra.mxu1 %v3841_v4  ;;  %v3425_v4 = vcombine.high %v4306_v57, %v4308_v58 }
 0x140   :  { %2187 = vmatpush1.bf16.msra.mxu0 %v3844_v5  ;;  %2106 = vmatprep.subr.bf16.mxu1 %v3849_v6  ;;  %v3948_v5 = vld [vmem:[#allocation7 + $0x34] ss:$24 sps:$4 sm:$0xff]   ;;  %v3904_v6 = vld [vmem:[#allocation8 + $0x760] ss:$24 sps:$4 sm:$0xff]  }
 0x141   :  { %2188 = vmatprep.subr.bf16.mxu0 %v3852_v7  ;;  %v3909_v7 = vld [vmem:[#allocation8 + $0x794] ss:$24 sps:$4 sm:$0xff]  }
 0x143   :  { %2107 = vmatpush1.bf16.msra.mxu1 %v3847_v8  ;;  %v3907_v8 = vld [vmem:[#allocation8 + $0x790] ss:$24 sps:$4 sm:$0xff]  }
 0x144   :  { %2189 = vmatpush1.bf16.msra.mxu0 %v3850_v9  ;;  %2108 = vmatprep.subr.bf16.mxu1 %v3855_v10  ;;  %v3912_v9 = vld [vmem:[#allocation8 + $0x7c4] ss:$24 sps:$4 sm:$0xff]  }
 0x145   :  { %2190 = vmatprep.subr.bf16.mxu0 %v3858_v11  ;;  %v4314_v10 = vld [vmem:[#allocation2 + $0x30] sm:$0xff]  ;;  %v4316_v11 = vld [vmem:[#allocation2 + $0x48] sm:$0xff] }
 0x147   :  { %2109 = vmatpush1.bf16.msra.mxu1 %v3853_v12  ;;  %v3910_v12 = vld [vmem:[#allocation8 + $0x7c0] ss:$24 sps:$4 sm:$0xff]  }
 0x148   :  { %2191 = vmatpush1.bf16.msra.mxu0 %v3856_v13  ;;  %2110 = vmatprep.subr.bf16.mxu1 %v3861_v14  ;;  %v3424_v13 = vcombine.low %v4306_v57, %v4308_v58  ;;  %v3915_v14 = vld [vmem:[#allocation8 + $0x7f4] ss:$24 sps:$4 sm:$0xff]  }
 0x149   :  { %2192 = vmatprep.subr.bf16.mxu0 %v3864_v15  ;;  %v3946_v15 = vld [vmem:[#allocation7 + $0x30] ss:$24 sps:$4 sm:$0xff]  }
 0x14b   :  { %2111 = vmatpush1.bf16.msra.mxu1 %v3859_v16  ;;  %v3433_v16 = vcombine.high %v4314_v10, %v4316_v11 }
 0x14c   :  { %2193 = vmatpush1.bf16.msra.mxu0 %v3862_v17  ;;  %2112 = vmatprep.subr.bf16.mxu1 %v3867_v18  ;;  %v3953_v17 = vld [vmem:[#allocation7 + $0x3c] ss:$24 sps:$4 sm:$0xff]   ;;  %v3913_v18 = vld [vmem:[#allocation8 + $0x7f0] ss:$24 sps:$4 sm:$0xff]  }
 0x14d   :  { %2194 = vmatprep.subr.bf16.mxu0 %v3870_v19  ;;  %v3918_v19 = vld [vmem:[#allocation8 + $0x824] ss:$24 sps:$4 sm:$0xff]  }
 0x14f   :  { %2113 = vmatpush1.bf16.msra.mxu1 %v3865_v20  ;;  %v4322_v20 = vld [vmem:[#allocation2 + $0x38] sm:$0xff] }
 0x150   :  { %2195 = vmatpush1.bf16.msra.mxu0 %v3868_v21  ;;  %2114 = vmatprep.subr.bf16.mxu1 %v3873_v22  ;;  %v4324_v21 = vld [vmem:[#allocation2 + $0x50] sm:$0xff]  ;;  %v3916_v22 = vld [vmem:[#allocation8 + $0x820] ss:$24 sps:$4 sm:$0xff]  }
 0x151   :  { %2196 = vmatprep.subr.bf16.mxu0 %v3876_v23  ;;  %v3432_v23 = vcombine.low %v4314_v10, %v4316_v11 }
 0x153   :  { %2115 = vmatpush1.bf16.msra.mxu1 %v3871_v24  ;;  %v3921_v24 = vld [vmem:[#allocation8 + $0x854] ss:$24 sps:$4 sm:$0xff]  }
 0x154   :  { %2197 = vmatpush1.bf16.msra.mxu0 %v3874_v25  ;;  %2116 = vmatprep.subr.bf16.mxu1 %v3879_v26  ;;  %v3951_v25 = vld [vmem:[#allocation7 + $0x38] ss:$24 sps:$4 sm:$0xff]   ;;  %v3435_v26 = vcombine.high %v4322_v20, %v4324_v21 }
 0x155   :  { %2198 = vmatprep.subr.bf16.mxu0 %v3882_v27  ;;  %v3958_v27 = vld [vmem:[#allocation7 + $0x44] ss:$24 sps:$4 sm:$0xff]  }
 0x157   :  { %2117 = vmatpush1.bf16.msra.mxu1 %v3877_v28  ;;  %v3919_v28 = vld [vmem:[#allocation8 + $0x850] ss:$24 sps:$4 sm:$0xff]  }
 0x158   :  { %2199 = vmatpush1.bf16.msra.mxu0 %v3880_v29  ;;  %2328 = vmatprep.subr.bf16.mxu1 %v3933_v31  ;;  %v3924_v29 = vld [vmem:[#allocation8 + $0x884] ss:$24 sps:$4 sm:$0xff]   ;;  %v3927_v31 = vld [vmem:[#allocation8 + $0x8b4] ss:$24 sps:$4 sm:$0xff]  }
 0x159   :  { %2209 = vmatprep.subr.bf16.mxu0 %v3885_v30  ;;  %v3922_v30 = vld [vmem:[#allocation8 + $0x880] ss:$24 sps:$4 sm:$0xff]  }
 0x15a   :  { %2119 = vmatmul.mubr.bf16.vlgmr.msra.gmra.mrb[4].mxu1 %v4289_v38 }
 0x15b   :  { %2201 = vmatmul.mubr.bf16.vlgmr.msra.gmra.mrb[4].mxu0 %v4257_v60  ;;  %2360 = vmatprep.mubr.bf16.mxu1 %v3421_v37  ;;  %v3892_v60 = vld [vmem:[#allocation8 + $0x6a0] ss:$24 sps:$4 sm:$0xff]   ;;  %v3925_v37 = vld [vmem:[#allocation8 + $0x8b0] ss:$24 sps:$4 sm:$0xff]  }
 0x15c   :  { %2210 = vmatpush1.bf16.msra.mxu0 %v3883_v34  ;;  %2241 = vmatprep.mubr.bf16.mxu0 %v4272_v40  ;;  %v3420_v40 = vcombine.low %v4283_v32, %v4285_v33  ;;  %v4330_v34 = vld [vmem:[#allocation2 + $0x40] sm:$0xff] }
 0x15d   :  { %2211 = vmatprep.subr.bf16.mxu0 %v3888_v35  ;;  %v4332_v35 = vld [vmem:[#allocation2 + $0x58] sm:$0xff] }
 0x160   :  { %2212 = vmatpush1.bf16.msra.mxu0 %v3886_v39  ;;  %2329 = vmatpush1.bf16.xpose.msra.mxu1 %v3931_v54  ;;  %v3434_v39 = vcombine.low %v4322_v20, %v4324_v21  ;;  %v3956_v54 = vld [vmem:[#allocation7 + $0x40] ss:$24 sps:$4 sm:$0xff]  }
 0x161   :  { %2213 = vmatprep.subr.bf16.mxu0 %v3891_v59  ;;  %2369 = vmatprep.subr.bf16.mxu1 %v3938_v41  ;;  %v3930_v59 = vld [vmem:[#allocation8 + $0x8e4] ss:$24 sps:$4 sm:$0xff]   ;;  %v3437_v41 = vcombine.high %v4330_v34, %v4332_v35 }
 0x164   :  { %2214 = vmatpush1.bf16.msra.mxu0 %v3889_v43  ;;  %v3928_v43 = vld [vmem:[#allocation8 + $0x8e0] ss:$24 sps:$4 sm:$0xff]  }
 0x165   :  { %2215 = vmatprep.subr.bf16.mxu0 %v3894_v44  ;;  %v3436_v44 = vcombine.low %v4330_v34, %v4332_v35 }
 0x167   :  { %2361 = vmatmul.mubr.bf16.vlgmr.msra.gmra.mrb[8].mxu1 %v3420_v40  ;;  %v4344_v40 = vld [vmem:[#allocation10] sm:$0x3f] }
 0x168   :  { %2216 = vmatpush1.bf16.msra.mxu0 %v3892_v60  ;;  %2370 = vmatpush1.bf16.xpose.msra.mxu1 %v3936_v47  ;;  %v4342_v60 = vsub.s32 0, %v4248_v42 }
 0x169   :  { %2217 = vmatprep.subr.bf16.mxu0 %v3897_v46  ;;  %2401 = vmatprep.mubr.bf16.mxu1 %v3423_v48  ;;  %v4347_v46 = vsub.s32 1, %v4248_v42 }
 0x16a   :  { %2410 = vmatprep.subr.bf16.mxu1 %v3943_v49  ;;  %v381_v47 = vrot.slane %v4344_v40, %v4342_v60 }
 0x16b   :  { %v385_v48 = vrot.slane %v4344_v40, %v4347_v46 }
 0x16c   :  { %2218 = vmatpush1.bf16.msra.mxu0 %v3895_v50 }
 0x16d   :  { %2219 = vmatprep.subr.bf16.mxu0 %v3900_v51  ;;  %v4302_v55 = vpop.f32.mrb[0].mxu1 }
 0x16e   :  { %v4304_v56 = vpop.f32.mrb[1].mxu1 }
 0x16f   :  { %v1919_v63 = vpop.f32.mrb[2].mxu1  ;;  %v1918_v49 = vadd.f32 %v4304_v56, %v385_v48  ;;  %v4384_v48 = vsub.s32 5, %v4248_v42 }
 0x170   :  { %2220 = vmatpush1.bf16.msra.mxu0 %v3898_v52  ;;  %v1920_v2 = vpop.f32.mrb[3].mxu1 }
 0x171   :  { %2221 = vmatprep.subr.bf16.mxu0 %v3903_v53 }
 0x173   :  { %2402 = vmatmul.mubr.bf16.vlgmr.msra.gmra.mrb[8].mxu1 %v3422_v0 }
 0x174   :  { %2222 = vmatpush1.bf16.msra.mxu0 %v3901_v61  ;;  %2411 = vmatpush1.bf16.xpose.msra.mxu1 %v3941_v3  ;;  %v4356_v3 = vsub.s32 2, %v4248_v42 }
 0x175   :  { %2223 = vmatprep.subr.bf16.mxu0 %v3906_v1  ;;  %2442 = vmatprep.mubr.bf16.mxu1 %v3425_v4  ;;  %v4359_v4 = vsub.s32 3, %v4248_v42 }
 0x176   :  { %2792 = vmatprep.subr.bf16.mxu1 %v3948_v5 }
 0x177   :  { %v393_v56 = vrot.slane %v4344_v40, %v4359_v4 }
 0x178   :  { %2224 = vmatpush1.bf16.msra.mxu0 %v3904_v6 }
 0x179   :  { %2225 = vmatprep.subr.bf16.mxu0 %v3909_v7 }
 0x17c   :  { %2226 = vmatpush1.bf16.msra.mxu0 %v3907_v8 }
 0x17d   :  { %2227 = vmatprep.subr.bf16.mxu0 %v3912_v9 }
 0x17f   :  { %2443 = vmatmul.mubr.bf16.vlgmr.msra.gmra.mrb[8].mxu1 %v3424_v13  ;;  %v4146_v13 = vmov 1966171168  }
 0x180   :  { %2228 = vmatpush1.bf16.msra.mxu0 %v3910_v12  ;;  %2793 = vmatpush1.bf16.xpose.msra.mxu1 %v3946_v15 }
 0x181   :  { %2229 = vmatprep.subr.bf16.mxu0 %v3915_v14  ;;  %2824 = vmatprep.mubr.bf16.mxu1 %v3433_v16  ;;  %v2489_v14 = vunpack.c.l.s4 %v4146_v13 }
 0x182   :  { %2833 = vmatprep.subr.bf16.mxu1 %v3953_v17 }
 0x183   :  { %v2490_v15 = vunpack.c.0.s8 %v2489_v14 }
 0x184   :  { %2230 = vmatpush1.bf16.msra.mxu0 %v3913_v18 }
 0x185   :  { %2231 = vmatprep.subr.bf16.mxu0 %v3918_v19  ;;  %v4366_v17 = vsub.s32 %v2490_v15, %v4248_v42 }
 0x187   :  { %2825 = vmatmul.mubr.bf16.vlgmr.msra.gmra.mrb[12].mxu1 %v3432_v23 }
 0x188   :  { %2232 = vmatpush1.bf16.msra.mxu0 %v3916_v22  ;;  %2834 = vmatpush1.bf16.xpose.msra.mxu1 %v3951_v25 }
 0x189   :  { %2233 = vmatprep.subr.bf16.mxu0 %v3921_v24  ;;  %2865 = vmatprep.mubr.bf16.mxu1 %v3435_v26 }
 0x18a   :  { %2874 = vmatprep.subr.bf16.mxu1 %v3958_v27 }
 0x18c   :  { %2234 = vmatpush1.bf16.msra.mxu0 %v3919_v28 }
 0x18d   :  { %2235 = vmatprep.subr.bf16.mxu0 %v3924_v29 }
 0x190   :  { %2236 = vmatpush1.bf16.msra.mxu0 %v3922_v30 }
 0x191   :  { %2237 = vmatprep.subr.bf16.mxu0 %v3927_v31 }
 0x193   :  { %2866 = vmatmul.mubr.bf16.vlgmr.msra.gmra.mrb[12].mxu1 %v3434_v39 }
 0x194   :  { %2238 = vmatpush1.bf16.msra.mxu0 %v3925_v37  ;;  %2875 = vmatpush1.bf16.xpose.msra.mxu1 %v3956_v54 }
 0x195   :  { %2239 = vmatprep.subr.bf16.mxu0 %v3930_v59  ;;  %2906 = vmatprep.mubr.bf16.mxu1 %v3437_v41 }
 0x198   :  { %2240 = vmatpush1.bf16.msra.mxu0 %v3928_v43 }
 0x19b   :  { %2242 = vmatmul.mubr.bf16.vlgmr.msra.gmra.mrb[4].mxu0 %v4289_v38  ;;  %v1916_v38 = vadd.f32 %v4302_v55, %v381_v47  ;;  %v389_v55 = vrot.slane %v4344_v40, %v4356_v3 }
 0x19f   :  { %2907 = vmatmul.mubr.bf16.vlgmr.msra.gmra.mrb[12].mxu1 %v3436_v44  ;;  %v4381_v44 = vsub.s32 4, %v4248_v42 }
 0x1ae   :  { %v1997_v50 = vpop.f32.mrb[0].mxu0 }
 0x1af   :  { %v3445_v51 = vadd.f32 %v1997_v50, %v1916_v38  ;;  %v1999_v52 = vpop.f32.mrb[1].mxu0 }
 0x1b0   :  { %v3447_v53 = vadd.f32 %v1999_v52, %v1918_v49  ;;  %v2001_v61 = vpop.f32.mrb[2].mxu0  ;;  %v401_v52 = vrot.slane %v4344_v40, %v4384_v48 }
 0x1b1   :  { %3961 = vtanh.f32 %v3445_v51  ;;  %v2002_v63 = vpop.f32.mrb[3].mxu0  ;;  %v397_v51 = vrot.slane %v4344_v40, %v4381_v44 }
 0x1b2   :  { %3963 = vtanh.f32 %v3447_v53 }
 0x1bb   :  { %v3962_v0 = vpop.eup %3961 }
 0x1bc   :  { %v3964_v1 = vpop.eup %3963 }
 0x1bd   :  { %v2485_v2 = vcombine.low %v3962_v0, %v3964_v1 }
 0x1bf   :  { %v4369_v22 = vrot.slane %v2485_v2, %v4366_v17 }
 0x22d   :  { %v2120_v5 = vpop.f32.mrb[4].mxu1 }
 0x22e   :  { %v3448_v6 = vadd.f32 %v2120_v5, %v389_v55  ;;  %v2122_v7 = vpop.f32.mrb[5].mxu1 }
 0x22f   :  { %v3449_v8 = vadd.f32 %v2122_v7, %v393_v56  ;;  %v2124_v9 = vpop.f32.mrb[6].mxu1 }
 0x230   :  { %3965 = vtanh.f32 %v3448_v6  ;;  %v2125_v12 = vpop.f32.mrb[7].mxu1 }
 0x231   :  { %3967 = vtanh.f32 %v3449_v8 }
 0x23a   :  { %v3966_v16 = vpop.eup %3965 }
 0x23b   :  { %v3968_v18 = vpop.eup %3967 }
 0x23c   :  { %v2486_v19 = vcombine.low %v3966_v16, %v3968_v18 }
 0x23e   :  { %v4372_v23 = vrot.slane %v2486_v19, %v4366_v17 }
 0x240   :  { %v2509_v24 = vcombine.low %v4369_v22, %v4372_v23  ;;  %v2510_v25 = vcombine.high %v4369_v22, %v4372_v23 }
 0x252   :  { %v2444_v26 = vpop.f32.mrb[8].mxu1 }
 0x253   :  { %v2452_v27 = vsel %vm2451_vm0, %v2444_v26, -inf  ;;  %v2446_v28 = vpop.f32.mrb[9].mxu1 }
 0x254   :  { %v2447_v29 = vpop.f32.mrb[10].mxu1  ;;  %v2936_v28 = vunpack.c.l.bf16 %v4316_v11 }
 0x255   :  { %v2453_v30 = vsel %vm2451_vm0, %v2447_v29, -inf  ;;  %v2449_v31 = vpop.f32.mrb[11].mxu1 }
 0x256   :  { %v2454_v37 = vmax.f32 %v2452_v27, %v2453_v30  ;;  %v2474_v27 = vunpack.c.h.bf16 %v4285_v33  ;;  %v2930_v31 = vunpack.c.l.bf16 %v4314_v10 }
 0x258   :  { %v2455_v39 = vsub.f32 %v2444_v26, %v2454_v37  ;;  %v2456_v59 = vsub.f32 %v2447_v29, %v2454_v37  ;;  %v2473_v26 = vunpack.c.l.bf16 %v4285_v33  ;;  %v2937_v29 = vunpack.c.h.bf16 %v4316_v11 }
 0x259   :  { %v2931_v37 = vunpack.c.h.bf16 %v4314_v10  ;;  %v2470_v10 = vunpack.c.h.bf16 %v4294_v45 }
 0x25a   :  { %v2457_v54 = vmul.f32 1.442695, %v2455_v39  ;;  %v2459_v41 = vmul.f32 1.442695, %v2456_v59  ;;  %v2932_v39 = vunpack.c.l.bf16 %v4322_v20  ;;  %v2933_v59 = vunpack.c.h.bf16 %v4322_v20 }
 0x25c   :  { %3969 = vpow2.f32 %v2457_v54  ;;  %v2934_v54 = vunpack.c.l.bf16 %v4330_v34 }
 0x25d   :  { %3971 = vpow2.f32 %v2459_v41  ;;  %v2935_v41 = vunpack.c.h.bf16 %v4330_v34  ;;  %v2525_v34 = vrot.slane %v2510_v25, %v4366_v17 }
 0x266   :  { %v3970_v43 = vpop.eup %3969 }
 0x267   :  { %v3972_v47 = vpop.eup %3971  ;;  %v2461_v38 = vsel %vm2451_vm0, %v3970_v43, 0.0 }
 0x268   :  { %v2462_v49 = vsel %vm2451_vm0, %v3972_v47, 0.0 }
 0x269   :  { %v2463_v50 = vadd.f32 %v2462_v49, %v2461_v38 }
 0x26b   :  { %3973 = vrcp.f32 %v2463_v50  ;;  %v2468_v50 = vunpack.c.h.bf16 %v4283_v32 }
 0x26e   :  { %v2243_v53 = vpop.f32.mrb[4].mxu0 }
 0x26f   :  { %v3450_v61 = vadd.f32 %v2243_v53, %v397_v51  ;;  %v2245_v63 = vpop.f32.mrb[5].mxu0  ;;  %v2469_v51 = vunpack.c.l.bf16 %v4294_v45 }
 0x270   :  { %v3451_v0 = vadd.f32 %v2245_v63, %v401_v52  ;;  %v2247_v1 = vpop.f32.mrb[6].mxu0  ;;  %v2471_v52 = vunpack.c.l.bf16 %v4306_v57  ;;  %v2472_v63 = vunpack.c.h.bf16 %v4306_v57 }
 0x271   :  { %3975 = vtanh.f32 %v3450_v61  ;;  %v2248_v2 = vpop.f32.mrb[7].mxu0 }
 0x272   :  { %3977 = vtanh.f32 %v3451_v0  ;;  %v2908_v55 = vpop.f32.mrb[12].mxu1  ;;  %v2939_v0 = vunpack.c.h.bf16 %v4324_v21 }
 0x273   :  { %v2915_v56 = vsel %vm2451_vm0, %v2908_v55, -inf  ;;  %v2910_v5 = vpop.f32.mrb[13].mxu1 }
 0x274   :  { %v2911_v6 = vpop.f32.mrb[14].mxu1 }
 0x275   :  { %v3974_v7 = vpop.eup %3973  ;;  %v2916_v8 = vsel %vm2451_vm0, %v2911_v6, -inf  ;;  %v2913_v9 = vpop.f32.mrb[15].mxu1 }
 0x276   :  { %v2917_v12 = vmax.f32 %v2915_v56, %v2916_v8  ;;  %v4394_v40 = vmul.f32 %v3974_v7, %v3970_v43  ;;  %v4396_v13 = vmul.f32 %v3974_v7, %v3972_v47  ;;  %v2467_v43 = vunpack.c.l.bf16 %v4283_v32 }
 0x277   :  { %v2518_v47 = vrot.slane %v2509_v24, %v4366_v17  ;;  %v2938_v32 = vunpack.c.l.bf16 %v4324_v21  ;;  %v2940_v7 = vunpack.c.l.bf16 %v4332_v35  ;;  %v2941_v8 = vunpack.c.h.bf16 %v4332_v35 }
 0x278   :  { %v2918_v14 = vsub.f32 %v2908_v55, %v2917_v12  ;;  %v2919_v15 = vsub.f32 %v2911_v6, %v2917_v12 }
 0x27a   :  { %v2920_v20 = vmul.f32 1.442695, %v2918_v14  ;;  %v2922_v1 = vmul.f32 1.442695, %v2919_v15 }
 0x27b   :  { %v3976_v16 = vpop.eup %3975 }
 0x27c   :  { %v3978_v18 = vpop.eup %3977  ;;  %3979 = vpow2.f32 %v2920_v20 }
 0x27d   :  { %v2487_v19 = vcombine.low %v3976_v16, %v3978_v18  ;;  %3981 = vpow2.f32 %v2922_v1 }
 0x27f   :  { %v2508_v30 = vrot.slane %v2487_v19, %v4366_v17 }
 0x281   :  { %v2511_v38 = vcombine.high %v2508_v30, %v2508_v30  ;;  %v2532_v49 = vrot.slane %v2508_v30, %v4366_v17  ;;  %v2475_v30 = vunpack.c.l.bf16 %v4296_v62 }
 0x283   :  { %v2539_v53 = vrot.slane %v2511_v38, %v4366_v17  ;;  %v2540_v24 = vcombine.low %v2518_v47, %v2532_v49  ;;  %v2942_v61 = vcombine.high %v2518_v47, %v2532_v49 }
 0x285   :  { %v4424_v45 = vcombine.low %v2525_v34, %v2539_v53  ;;  %v4426_v2 = vcombine.high %v2525_v34, %v2539_v53  ;;  %v2947_v55 = vrot.slane %v2942_v61, %v4342_v60  ;;  %v2951_v22 = vrot.slane %v2942_v61, %v4347_v46 }
 0x286   :  { %v2955_v23 = vrot.slane %v2942_v61, %v4356_v3  ;;  %v2959_v17 = vrot.slane %v2942_v61, %v4359_v4  ;;  %v2963_v25 = vrot.slane %v2942_v61, %v4381_v44  ;;  %v2545_v21 = vrot.slane %v2540_v24, %v4342_v60 }
 0x287   :  { %v3004_v57 = vmul.f32 %v2947_v55, %v2930_v31  ;;  %v3005_v56 = vmul.f32 %v2951_v22, %v2931_v37  ;;  %v2549_v5 = vrot.slane %v2540_v24, %v4347_v46  ;;  %v2967_v6 = vrot.slane %v2942_v61, %v4384_v48 }
 0x288   :  { %v3006_v9 = vmul.f32 %v2955_v23, %v2932_v39  ;;  %v2553_v14 = vrot.slane %v2540_v24, %v4356_v3  ;;  %v2557_v15 = vrot.slane %v2540_v24, %v4359_v4  ;;  %v2602_v16 = vmul.f32 %v2545_v21, %v2467_v43  ;;  %v3980_v23 = vpop.eup %3979 }
 0x289   :  { %v3016_v12 = vadd.f32 %v3005_v56, %v3004_v57  ;;  %v2603_v18 = vmul.f32 %v2549_v5, %v2468_v50  ;;  %v2971_v19 = vrot.slane %v4426_v2, %v4342_v60  ;;  %v3007_v31 = vmul.f32 %v2959_v17, %v2933_v59 }
 0x28a   :  { %v3008_v37 = vmul.f32 %v2963_v25, %v2934_v54  ;;  %v2561_v38 = vrot.slane %v2540_v24, %v4381_v44  ;;  %v2604_v35 = vmul.f32 %v2553_v14, %v2469_v51  ;;  %v2975_v39 = vrot.slane %v4426_v2, %v4347_v46 }
 0x28b   :  { %v3017_v47 = vadd.f32 %v3016_v12, %v3006_v9  ;;  %v2614_v49 = vadd.f32 %v2603_v18, %v2602_v16  ;;  %v2979_v20 = vrot.slane %v4426_v2, %v4356_v3  ;;  %v3009_v43 = vmul.f32 %v2967_v6, %v2935_v41 }
 0x28c   :  { %v2565_v34 = vrot.slane %v2540_v24, %v4384_v48  ;;  %v2605_v53 = vmul.f32 %v2557_v15, %v2470_v10  ;;  %v2983_v59 = vrot.slane %v4426_v2, %v4359_v4  ;;  %v3010_v54 = vmul.f32 %v2971_v19, %v2936_v28 }
 0x28d   :  { %v3018_v50 = vadd.f32 %v3017_v47, %v3007_v31  ;;  %v2615_v61 = vadd.f32 %v2614_v49, %v2604_v35  ;;  %v3011_v51 = vmul.f32 %v2975_v39, %v2937_v29  ;;  %v2606_v55 = vmul.f32 %v2561_v38, %v2471_v52  ;;  %v3982_v52 = vpop.eup %3981 }
 0x28e   :  { %v2987_v22 = vrot.slane %v4426_v2, %v4381_v44  ;;  %v3012_v41 = vmul.f32 %v2979_v20, %v2938_v32  ;;  %v2569_v10 = vrot.slane %v4424_v45, %v4342_v60  ;;  %v2573_v25 = vrot.slane %v4424_v45, %v4347_v46 }
 0x28f   :  { %v3019_v1 = vadd.f32 %v3018_v50, %v3008_v37  ;;  %v2616_v17 = vadd.f32 %v2615_v61, %v2605_v53  ;;  %v3023_v24 = vadd.f32 %v3011_v51, %v3010_v54  ;;  %v2607_v28 = vmul.f32 %v2565_v34, %v2472_v63 }
 0x290   :  { %v2991_v11 = vrot.slane %v4426_v2, %v4384_v48  ;;  %v2577_v29 = vrot.slane %v4424_v45, %v4356_v3  ;;  %v3013_v32 = vmul.f32 %v2983_v59, %v2939_v0  ;;  %v2608_v5 = vmul.f32 %v2569_v10, %v2473_v26 }
 0x291   :  { %v3020_v57 = vadd.f32 %v3019_v1, %v3009_v43  ;;  %v2617_v56 = vadd.f32 %v2616_v17, %v2606_v55  ;;  %v3024_v21 = vadd.f32 %v3023_v24, %v3012_v41  ;;  %v2476_v6 = vunpack.c.h.bf16 %v4296_v62 }
 0x292   :  { %v2477_v46 = vunpack.c.l.bf16 %v4308_v58  ;;  %v2581_v63 = vrot.slane %v4424_v45, %v4359_v4  ;;  %v2609_v2 = vmul.f32 %v2573_v25, %v2474_v27  ;;  %v3014_v3 = vmul.f32 %v2987_v22, %v2940_v7 }
 0x293   :  { %3021 = vadd.xlane.f32.xlu1 %v3020_v57  ;;  %v2618_v9 = vadd.f32 %v2617_v56, %v2607_v28  ;;  %v3025_v12 = vadd.f32 %v3024_v21, %v3013_v32  ;;  %v2924_v0 = vsel %vm2451_vm0, %v3980_v23, 0.0  ;;  %v2585_v14 = vrot.slane %v4424_v45, %v4381_v44 }
 0x294   :  { %v2610_v26 = vmul.f32 %v2577_v29, %v2475_v30  ;;  %v2621_v15 = vadd.f32 %v2609_v2, %v2608_v5  ;;  %v2925_v62 = vsel %vm2451_vm0, %v3982_v52, 0.0  ;;  %v3015_v16 = vmul.f32 %v2991_v11, %v2941_v8 }
 0x295   :  { %2619 = vadd.xlane.f32.xlu0 %v2618_v9  ;;  %v3026_v18 = vadd.f32 %v3025_v12, %v3014_v3  ;;  %v2926_v19 = vadd.f32 %v2925_v62, %v2924_v0  ;;  %v2478_v4 = vunpack.c.h.bf16 %v4308_v58  ;;  %v2589_v33 = vrot.slane %v4424_v45, %v4384_v48 }
 0x296   :  { %v2611_v27 = vmul.f32 %v2581_v63, %v2476_v6  ;;  %v2622_v7 = vadd.f32 %v2621_v15, %v2610_v26  ;;  %v2612_v37 = vmul.f32 %v2585_v14, %v2477_v46 }
 0x297   :  { %v3027_v31 = vadd.f32 %v3026_v18, %v3015_v16  ;;  %3983 = vrcp.f32 %v2926_v19  ;;  %v2613_v44 = vmul.f32 %v2589_v33, %v2478_v4 }
 0x298   :  { %v2623_v47 = vadd.f32 %v2622_v7, %v2611_v27 }
 0x299   :  { %3028 = vadd.xlane.f32.xlu1 %v3027_v31 }
 0x29a   :  { %v2624_v30 = vadd.f32 %v2623_v47, %v2612_v37 }
 0x29c   :  { %v2625_v38 = vadd.f32 %v2624_v30, %v2613_v44 }
 0x29e   :  { %2626 = vadd.xlane.f32.xlu0 %v2625_v38 }
 0x2a1   :  { %v3984_v35 = vpop.eup %3983 }
 0x2a2   :  { %v4480_v8 = vmul.f32 %v3984_v35, %v3980_v23  ;;  %v4482_v49 = vmul.f32 %v3984_v35, %v3982_v52 }
 0x320   :  { %v4484_v58 = vpop.xlane.xlu1 %3021 }
 0x321   :  { %v3030_v48 = vmul.f32 %v4484_v58, %v4480_v8 }
 0x322   :  { %v4489_v39 = vpop.xlane.xlu0 %2619 }
 0x323   :  { %v3032_v45 = vsel %vm2451_vm0, %v3030_v48, 0.0  ;;  %v2628_v43 = vmul.f32 %v4489_v39, %v4394_v40 }
 0x324   :  { %v3033_v20 = vrot.slane %v3032_v45, 4 }
 0x325   :  { %v2630_v34 = vsel %vm2451_vm0, %v2628_v43, 0.0 }
 0x326   :  { %v3034_v50 = vadd.f32 %v3033_v20, %v3032_v45  ;;  %v2631_v53 = vrot.slane %v2630_v34, 4  ;;  %v4494_v61 = vpop.xlane.xlu1 %3028 }
 0x327   :  { %v3031_v54 = vmul.f32 %v4494_v61, %v4482_v49 }
 0x328   :  { %v3035_v59 = vrot.slane %v3034_v50, 2  ;;  %v2632_v51 = vadd.f32 %v2631_v53, %v2630_v34 }
 0x329   :  { %v3039_v1 = vsel %vm2451_vm0, %v3031_v54, 0.0 }
 0x32a   :  { %v3036_v55 = vadd.f32 %v3035_v59, %v3034_v50  ;;  %v3040_v22 = vrot.slane %v3039_v1, 4  ;;  %v2633_v41 = vrot.slane %v2632_v51, 2 }
 0x32b   :  { %v4499_v23 = vpop.xlane.xlu0 %2626 }
 0x32c   :  { %v3041_v17 = vadd.f32 %v3040_v22, %v3039_v1  ;;  %v2629_v24 = vmul.f32 %v4499_v23, %v4396_v13  ;;  %v3037_v10 = vrot.slane %v3036_v55, 1  ;;  %v2634_v28 = vadd.f32 %v2633_v41, %v2632_v51 }
 0x32e   :  { %v3042_v25 = vrot.slane %v3041_v17, 2  ;;  %v2637_v57 = vsel %vm2451_vm0, %v2629_v24, 0.0  ;;  %v3038_v56 = vadd.f32 %v3037_v10, %v3036_v55  ;;  %v2635_v21 = vrot.slane %v2634_v28, 1 }
 0x32f   :  { %v2638_v11 = vrot.slane %v2637_v57, 4 }
 0x330   :  { %v3043_v29 = vadd.f32 %v3042_v25, %v3041_v17  ;;  %v3046_v63 = vsel %vm2451_vm0, %v3038_v56, -inf  ;;  %v2636_v9 = vadd.f32 %v2635_v21, %v2634_v28 }
 0x331   :  { %v2639_v52 = vadd.f32 %v2638_v11, %v2637_v57 }
 0x332   :  { %v3044_v32 = vrot.slane %v3043_v29, 1  ;;  %v2644_v15 = vsel %vm2451_vm0, %v2636_v9, -inf }
 0x333   :  { %v2640_v5 = vrot.slane %v2639_v52, 2 }
 0x334   :  { %v3045_v6 = vadd.f32 %v3044_v32, %v3043_v29 }
 0x335   :  { %v2641_v46 = vadd.f32 %v2640_v5, %v2639_v52 }
 0x336   :  { %v3047_v2 = vsel %vm2451_vm0, %v3045_v6, -inf }
 0x337   :  { %v3048_v3 = vmax.f32 %v3046_v63, %v3047_v2  ;;  %v2642_v12 = vrot.slane %v2641_v46, 1 }
 0x339   :  { %v3049_v0 = vsub.f32 %v3038_v56, %v3048_v3  ;;  %v3050_v14 = vsub.f32 %v3045_v6, %v3048_v3  ;;  %v2643_v26 = vadd.f32 %v2642_v12, %v2641_v46 }
 0x33b   :  { %v3053_v62 = vmul.f32 1.442695, %v3050_v14  ;;  %v2645_v16 = vsel %vm2451_vm0, %v2643_v26, -inf  ;;  %v3051_v18 = vmul.f32 1.442695, %v3049_v0 }
 0x33c   :  { %v2646_v19 = vmax.f32 %v2644_v15, %v2645_v16 }
 0x33d   :  { %3985 = vpow2.f32 %v3053_v62 }
 0x33e   :  { %v2647_v4 = vsub.f32 %v2636_v9, %v2646_v19  ;;  %v2648_v33 = vsub.f32 %v2643_v26, %v2646_v19  ;;  %3987 = vpow2.f32 %v3051_v18 }
 0x340   :  { %v2651_v27 = vmul.f32 1.442695, %v2648_v33  ;;  %v2649_v7 = vmul.f32 1.442695, %v2647_v4 }
 0x342   :  { %3989 = vpow2.f32 %v2651_v27 }
 0x343   :  { %3991 = vpow2.f32 %v2649_v7 }
 0x347   :  { %v3986_v31 = vpop.eup %3985 }
 0x348   :  { %v3057_v37 = vrot.slane %v3986_v31, 7  ;;  %v3988_v47 = vpop.eup %3987 }
 0x34a   :  { %v3058_v44 = vsel %vm2656_vm1, %v3057_v37, %v3988_v47 }
 0x34b   :  { %v3060_v30 = vsel %vm2659_vm2, %v3058_v44, 0.0 }
 0x34c   :  { %v3990_v38 = vpop.eup %3989  ;;  %v3061_v35 = vrot.slane %v3060_v30, 4 }
 0x34d   :  { %v2655_v48 = vrot.slane %v3990_v38, 7  ;;  %v3992_v45 = vpop.eup %3991 }
 0x34e   :  { %v3062_v20 = vadd.f32 %v3061_v35, %v3060_v30 }
 0x34f   :  { %v2657_v43 = vsel %vm2656_vm1, %v2655_v48, %v3992_v45 }
 0x350   :  { %v2660_v50 = vsel %vm2659_vm2, %v2657_v43, 0.0  ;;  %v3063_v34 = vrot.slane %v3062_v20, 2 }
 0x351   :  { %v2661_v53 = vrot.slane %v2660_v50, 4 }
 0x352   :  { %v3064_v59 = vadd.f32 %v3063_v34, %v3062_v20 }
 0x353   :  { %v2662_v54 = vadd.f32 %v2661_v53, %v2660_v50 }
 0x354   :  { %v3065_v51 = vrot.slane %v3064_v59, 1 }
 0x355   :  { %v2663_v1 = vrot.slane %v2662_v54, 2 }
 0x356   :  { %v3066_v55 = vadd.f32 %v3065_v51, %v3064_v59 }
 0x357   :  { %v2664_v22 = vadd.f32 %v2663_v1, %v2662_v54 }
 0x358   :  { %3993 = vrcp.f32 %v3066_v55 }
 0x359   :  { %v2665_v41 = vrot.slane %v2664_v22, 1 }
 0x35b   :  { %v2666_v17 = vadd.f32 %v2665_v41, %v2664_v22 }
 0x35d   :  { %3995 = vrcp.f32 %v2666_v17 }
 0x362   :  { %v3994_v24 = vpop.eup %3993 }
 0x363   :  { %v3071_v10 = vrot.slane %v3994_v24, %v4342_v60 }
 0x365   :  { %v3073_v28 = vmul.f32 %v3986_v31, %v3071_v10  ;;  %v3072_v11 = vmul.f32 %v3988_v47, %v3071_v10 }
 0x367   :  { %v3996_v25 = vpop.eup %3995  ;;  %v3081_v21 = vrot.slane %v3073_v28, %v4342_v60  ;;  %v3077_v5 = vrot.slane %v3072_v11, %v4342_v60 }
 0x368   :  { %v2671_v57 = vrot.slane %v3996_v25, %v4342_v60 }
 0x369   :  { %v3083_v9 = vmul.f32 %v3081_v21, %v4482_v49  ;;  %v3082_v3 = vmul.f32 %v3077_v5, %v4480_v8 }
 0x36a   :  { %v2673_v29 = vmul.f32 %v3990_v38, %v2671_v57  ;;  %v2672_v52 = vmul.f32 %v3992_v45, %v2671_v57 }
 0x36b   :  { %v3087_v12 = vsel %vm2451_vm0, %v3083_v9, 0.0  ;;  %v3084_v0 = vsel %vm2451_vm0, %v3082_v3, 0.0 }
 0x36c   :  { %v2681_v56 = vrot.slane %v2673_v29, %v4342_v60  ;;  %v2677_v32 = vrot.slane %v2672_v52, %v4342_v60  ;;  %v2695_v60 = vand.u32 127, %v378_v36 }
 0x36e   :  { %v2683_v6 = vmul.f32 %v2681_v56, %v4396_v13  ;;  %v2682_v46 = vmul.f32 %v2677_v32, %v4394_v40  ;;  %v2698_v40 = vsub.s32 %v2695_v60, %v4248_v42 }
 0x370   :  { %v2687_v63 = vsel %vm2451_vm0, %v2683_v6, 0.0  ;;  %v2684_v2 = vsel %vm2451_vm0, %v2682_v46, 0.0 }
 0x371   :  { %2688 = vadd.xlane.f32.xlu1 %v2687_v63  ;;  %2685 = vadd.xlane.f32.xlu0 %v2684_v2 }
 0x375   :  { %3088 = vadd.xlane.f32.xlu1 %v3087_v12  ;;  %3085 = vadd.xlane.f32.xlu0 %v3084_v0 }
 0x3fe   :  { %v2689_v13 = vpop.xlane.xlu1 %2688  ;;  %v2686_v14 = vpop.xlane.xlu0 %2685 }
 0x3ff   :  { %v2691_v26 = vmul.f32 %v2689_v13, %v4499_v23  ;;  %v2690_v49 = vmul.f32 %v2686_v14, %v4489_v39 }
 0x401   :  { %v2703_v15 = vrot.slane %v2691_v26, %v2698_v40  ;;  %v2699_v8 = vrot.slane %v2690_v49, %v2698_v40 }
 0x402   :  { %v3089_v62 = vpop.xlane.xlu1 %3088  ;;  %v3086_v16 = vpop.xlane.xlu0 %3085 }
 0x403   :  { %v3091_v18 = vmul.f32 %v3089_v62, %v4494_v61  ;;  %v3090_v19 = vmul.f32 %v3086_v16, %v4484_v58  ;;  %v2704_v4 = vsel %vm2656_vm1, %v2703_v15, %v2699_v8 }
 0x404   :  { %v2707_v36 = vsel %vm2706_vm3, %v2704_v4, 0.0 }
 0x405   :  { %v3101_v33 = vrot.slane %v3091_v18, %v2698_v40  ;;  %v3097_v42 = vrot.slane %v3090_v19, %v2698_v40  ;;  %2708 = vadd.xlane.f32.xlu0 %v2707_v36 }
 0x407   :  { %v3102_v27 = vsel %vm2656_vm1, %v3101_v33, %v3097_v42 }
 0x408   :  { %v3104_v23 = vsel %vm2706_vm3, %v3102_v27, 0.0 }
 0x409   :  { %3105 = vadd.xlane.f32.xlu1 %v3104_v23 }
 0x492   :  { %v2709_v39 = vpop.xlane.xlu0 %2708 }
 0x493   :  { %v2714_v7 = vrot.slane %v2709_v39, %v2698_v40 }
 0x495   :  { %2717 = vst.msk [vmem:[#allocation11] sm:$0x1] %vm2716_vm4, %v2714_v7 }
 0x496   :  { %v3106_v31 = vpop.xlane.xlu1 %3105 }
 0x497   :  { %v3111_v61 = vrot.slane %v3106_v31, %v2698_v40 }
 0x499   :  { %3113 = vst.msk [vmem:[#allocation11 + $0x1] sm:$0x1] %vm2716_vm4, %v3111_v61 }
 0x49a   :  { %4119 = shalt.err (!%p4116_p2)
}
 0x49b   :  { %s4120_s28 = scalar_lea.hbm %s4549_s5, 32 }
 0x49c   :  { %p4121_p3 = scmp.ne.s32.totalorder %s4549_s5, %s4120_s28  ;;  %p4124_p4 = scmp.lt.u32.totalorder %s4120_s28, %s4549_s5 }
 0x49e   :  { %p4126_p5 = pnand %p4124_p4, %p4121_p3 }
 0x4a0   :  { %4129 = shalt.err (!%p4126_p5)
}
 0x4a1   :  { %3123 = dma.vmem_to_hbm [thread:$0]  %s3121_s17, 32, %s4549_s5, [#allocation4]  }
 0x4a2   :  { %4136 = dma.done.wait [#allocation4], 32  }
 0x4a3   :  { %4137 = vsyncadd [#allocation4], 4294967264 }
 0x4a4   :  { %3127 = vsyncpa [#allocation3], 1 }
 0x4a5   :  { %3128 = vsyncpa [#allocation6], 1 }
 0x4a6   :  { %3129 = vsyncpa [#allocation9], 1 }
 0x4a7   :  { %3130 = vsyncpa [#allocation4], 1 }

</bundles_post_ra>
